<compile_context>
chip_gen: v5e
topology: v5e:2x2
jax: 0.10.0
libtpu: 0.0.40
codegen_flags: <defaults>
</compile_context>

<pallas_src>
import functools
import math

import jax
import jax.numpy as jnp
from jax.experimental import pallas as pl
from jax.experimental.pallas import tpu as pltpu

_MIB = 1024 * 1024
# Scoped-VMEM ceiling that is valid on v5e/v6e (128 MiB physical) and v7x (64 MiB).
_VMEM_CAP_BYTES = 48 * _MIB
_VMEM_FLOOR_BYTES = 32 * _MIB


def _vmem_limit(estimate_bytes):
    """Scoped-VMEM limit derived from the actual block shapes (+50% headroom)."""
    return int(min(max(int(estimate_bytes * 1.5), _VMEM_FLOOR_BYTES), _VMEM_CAP_BYTES))


# --------------------------------------------------------------------------
# Kernel 1: fused Q/K/V projection (+ bias) and head split.
# --------------------------------------------------------------------------
def _qkv_proj_kernel(*refs, num_x, num_heads, d_k, compute_dtype):
    """refs = (x_q[, x_k, x_v], w_qkv, b_qkv, qp, kp, vp).

    x refs : (1, ts, D) activations (a single shared ref in the self-attn case).
    w_qkv  : (3, D, D) pre-transposed (in, out) packed weights, VMEM resident.
             Row 0 (W_q) already carries the log2(e)/sqrt(d_k) attention scale.
    b_qkv  : (3, 1, D) packed biases (row 0 scaled likewise), f32.
    outputs: (1, H, ts, d_k) per-head projections in compute_dtype.
    """
    x_refs = refs[:num_x]
    w_ref, b_ref = refs[num_x], refs[num_x + 1]
    out_refs = refs[num_x + 2:]

    for idx, o_ref in enumerate(out_refs):
        x_ref = x_refs[idx] if num_x == 3 else x_refs[0]
        x = x_ref[0].astype(compute_dtype)                              # (ts, D)
        # Weights were transposed once on the host: no in-kernel `.T`.
        y = jnp.dot(x, w_ref[idx],
                    preferred_element_type=jnp.float32) + b_ref[idx]    # (ts, D) f32
        y = y.astype(o_ref.dtype)
        # split_heads: a handful of tile copies per projection tile (outside any
        # hot loop); full-width unmasked stores when d_k % 128 == 0.
        for h in range(num_heads):
            o_ref[0, h] = y[:, h * d_k:(h + 1) * d_k]


# --------------------------------------------------------------------------
# Kernel 2: flash attention over KV tiles + combine heads + W_o projection.
# --------------------------------------------------------------------------
def _flash_attn_kernel(qp_ref, kp_ref, vp_ref, wo_ref, bo_ref, o_ref,
                       m_sc, l_sc, acc_sc, *, num_heads, compute_dtype,
                       approx_recip):
    ki = pl.program_id(2)

    @pl.when(ki == 0)
    def _init():
        m_sc[...] = jnp.full(m_sc.shape, -jnp.inf, dtype=m_sc.dtype)
        l_sc[...] = jnp.zeros(l_sc.shape, dtype=l_sc.dtype)
        acc_sc[...] = jnp.zeros(acc_sc.shape, dtype=acc_sc.dtype)

    q = qp_ref[0]                                   # (H, tq, d_k), compute_dtype
    k = kp_ref[0]                                   # (H, tk, d_k)
    v = vp_ref[0]                                   # (H, tk, d_k)

    # All heads batched into one MXU dot_general.  The 1/sqrt(d_k)*log2(e) scale
    # was folded into W_q/b_q on the host, so no per-step scale multiply and the
    # online softmax can use exp2 directly (EUP pow2 slot, no x*log2e VALU mul).
    s = jnp.einsum("hqd,hkd->hqk", q, k,
                   preferred_element_type=jnp.float32)                   # (H, tq, tk)

    m_prev = m_sc[...]                                                   # (H, tq, 1)
    m_new = jnp.maximum(m_prev, jnp.max(s, axis=-1, keepdims=True))
    alpha = jnp.exp2(m_prev - m_new)
    p = jnp.exp2(s - m_new)                                              # (H, tq, tk) f32

    l_sc[...] = alpha * l_sc[...] + jnp.sum(p, axis=-1, keepdims=True)
    acc_sc[...] = alpha * acc_sc[...] + jnp.einsum(
        "hqk,hkd->hqd", p.astype(compute_dtype), v,
        preferred_element_type=jnp.float32)                              # (H, tq, d_k)
    m_sc[...] = m_new

    @pl.when(ki == pl.num_programs(2) - 1)
    def _finish():
        # 1/denominator: approx (EUP) only on the bf16 fast path; exact on f32.
        attn = acc_sc[...] * pl.reciprocal(l_sc[...], approx=approx_recip)
        # combine_heads: epilogue-only lane concat (once per q-tile, outside the
        # kv loop; a pure tile copy when d_k is a multiple of 128).
        comb = jnp.concatenate([attn[h] for h in range(num_heads)], axis=-1)  # (tq, D)
        # Output projection with pre-transposed W_o; lane-dense (tq, D) store.
        out = jnp.dot(comb.astype(compute_dtype), wo_ref[...],
                      preferred_element_type=jnp.float32) + bo_ref[...]
        o_ref[0] = out.astype(o_ref.dtype)


# --------------------------------------------------------------------------
# Wrapper
# --------------------------------------------------------------------------
def multi_head_attention(Q, K, V, params, *, num_heads,
                         compute_dtype=jnp.bfloat16,
                         block_q=512, block_kv=512, block_proj=512):
    """Q, K, V: (B, S, D) float32.  params: torch-layout weights W_* (out, in), b_* (D,).

    Defaults target v5e/v6e (block_q=block_kv=512 amortizes the HBM-bound KV
    re-read); on v7x (64 MiB VMEM) prefer block_kv=256.
    """
    B, S, D = Q.shape
    assert D % num_heads == 0, "d_model must be divisible by num_heads"
    d_k = D // num_heads

    block_q = min(block_q, S)
    block_kv = min(block_kv, S)
    block_proj = min(block_proj, S)
    # v7x megacore: keep the parallel extent B*(S/block_q) >= 2 so both TCs work.
    while (B * (S // block_q) < 2 and block_q > 128 and block_q % 2 == 0
           and S % (block_q // 2) == 0):
        block_q //= 2
    assert S % block_q == 0 and S % block_kv == 0 and S % block_proj == 0, \
        "sequence length must be divisible by the sequence tile sizes"

    cdtype = jnp.dtype(compute_dtype)
    f32 = jnp.float32
    itemsize = cdtype.itemsize
    approx_recip = cdtype != jnp.dtype(jnp.float32)

    # Host-side (free) weight prep: transpose to (in, out) so kernels never do
    # `.T`, fold the attention scale * log2(e) into W_q/b_q (exp2 softmax, no
    # per-kv-step scale multiply), pack the three projection weights into one
    # contiguous array, and cast MXU operands to compute_dtype.  Biases stay f32.
    qk_scale = math.log2(math.e) / math.sqrt(d_k)
    w_qkv = jnp.stack([params["W_q"].T * qk_scale,
                       params["W_k"].T,
                       params["W_v"].T]).astype(compute_dtype)       # (3, D, D)
    b_qkv = jnp.stack([params["b_q"] * qk_scale,
                       params["b_k"],
                       params["b_v"]]).reshape(3, 1, D).astype(f32)  # (3, 1, D)
    w_o = params["W_o"].T.astype(compute_dtype)                      # (D, D)
    b_o = params["b_o"].reshape(1, D).astype(f32)                    # (1, D)

    # Constant operands: whole-array VMEM residents (single buffer, one DMA).
    vmem_full = pl.BlockSpec(memory_space=pltpu.MemorySpace.VMEM)

    # Self-attention dedup: read the shared activations from HBM only once.
    self_attn = (Q is K) and (K is V)
    num_x = 1 if self_attn else 3
    x_args = (Q,) if self_attn else (Q, K, V)

    # ---------------- Kernel 1: fused QKV projection + head split ----------------
    proj_kernel = functools.partial(_qkv_proj_kernel, num_x=num_x,
                                    num_heads=num_heads, d_k=d_k,
                                    compute_dtype=compute_dtype)
    head_shape = jax.ShapeDtypeStruct((B, num_heads, S, d_k), compute_dtype)
    x_spec = pl.BlockSpec((1, block_proj, D), lambda b, s: (b, s, 0))
    head_spec = pl.BlockSpec((1, num_heads, block_proj, d_k), lambda b, s: (b, 0, s, 0))

    proj_vmem_est = (
        2 * num_x * block_proj * D * 4            # double-buffered x blocks (f32)
        + 3 * D * D * itemsize + 3 * D * 4        # resident packed weights + bias
        + 2 * 3 * block_proj * D * itemsize       # double-buffered head outputs
        + 3 * block_proj * D * 4)                 # f32 matmul temporaries

    qp, kp, vp = pl.pallas_call(
        proj_kernel,
        out_shape=(head_shape, head_shape, head_shape),
        grid_spec=pltpu.PrefetchScalarGridSpec(
            num_scalar_prefetch=0,
            grid=(B, S // block_proj),
            in_specs=[x_spec] * num_x + [vmem_full, vmem_full],
            out_specs=[head_spec, head_spec, head_spec],
        ),
        compiler_params=pltpu.CompilerParams(
            dimension_semantics=("parallel", "parallel"),
            vmem_limit_bytes=_vmem_limit(proj_vmem_est)),
        cost_estimate=pl.CostEstimate(
            flops=3 * 2 * B * S * D * D,
            transcendentals=0,
            bytes_accessed=(num_x * B * S * D * 4 + 3 * D * D * itemsize + 3 * D * 4
                            + 3 * B * S * D * itemsize)),
    )(*x_args, w_qkv, b_qkv)

    # ------------- Kernel 2: flash attention + combine heads + W_o ---------------
    flash_kernel = functools.partial(_flash_attn_kernel, num_heads=num_heads,
                                     compute_dtype=compute_dtype,
                                     approx_recip=approx_recip)
    q_spec = pl.BlockSpec((1, num_heads, block_q, d_k),
                          lambda b, qi, ki: (b, 0, qi, 0))
    kv_spec = pl.BlockSpec((1, num_heads, block_kv, d_k),
                           lambda b, qi, ki: (b, 0, ki, 0))

    n_q = S // block_q
    attn_vmem_est = (
        2 * block_q * D * itemsize                # double-buffered q blocks
        + 2 * 2 * block_kv * D * itemsize         # double-buffered k/v blocks
        + D * D * itemsize + D * 4                # resident W_o + b_o
        + 2 * block_q * D * 4                     # double-buffered output blocks
        + 2 * num_heads * block_q * 4             # m/l scratch
        + block_q * D * 4                         # acc scratch
        + 2 * num_heads * block_q * block_kv * 4) # f32 s/p temporaries

    out = pl.pallas_call(
        flash_kernel,
        out_shape=jax.ShapeDtypeStruct((B, S, D), Q.dtype),
        grid_spec=pltpu.PrefetchScalarGridSpec(
            num_scalar_prefetch=0,
            grid=(B, n_q, S // block_kv),
            in_specs=[q_spec, kv_spec, kv_spec, vmem_full, vmem_full],
            out_specs=pl.BlockSpec((1, block_q, D), lambda b, qi, ki: (b, qi, 0)),
            scratch_shapes=[
                pltpu.VMEM((num_heads, block_q, 1), jnp.float32),    # running max
                pltpu.VMEM((num_heads, block_q, 1), jnp.float32),    # running denom
                pltpu.VMEM((num_heads, block_q, d_k), jnp.float32),  # output accum
            ]),
        compiler_params=pltpu.CompilerParams(
            dimension_semantics=("parallel", "parallel", "arbitrary"),
            vmem_limit_bytes=_vmem_limit(attn_vmem_est)),
        cost_estimate=pl.CostEstimate(
            flops=4 * B * num_heads * S * S * d_k + 2 * B * S * D * D,
            transcendentals=B * num_heads * S * S,
            bytes_accessed=(B * S * D * itemsize               # Q read once
                            + 2 * B * S * D * itemsize * n_q   # K/V re-read per q-tile
                            + D * D * itemsize + D * 4         # W_o/b_o (resident)
                            + B * S * D * 4)),                 # output write
    )(qp, kp, vp, w_o, b_o)
    return out


# --------------------------------------------------------------------------
# Pure-JAX reference mirroring the PyTorch module (f32).
# --------------------------------------------------------------------------
def reference_mha(Q, K, V, params, *, num_heads):
    B, S, D = Q.shape
    d_k = D // num_heads

    def lin(x, w, b):
        return jnp.einsum("bsd,ed->bse", x, w) + b

    def split(x):
        return x.reshape(B, S, num_heads, d_k).transpose(0, 2, 1, 3)

    Qp = split(lin(Q, params["W_q"], params["b_q"]))
    Kp = split(lin(K, params["W_k"], params["b_k"]))
    Vp = split(lin(V, params["W_v"], params["b_v"]))
    scores = jnp.einsum("bhqd,bhkd->bhqk", Qp, Kp) / math.sqrt(d_k)
    probs = jax.nn.softmax(scores, axis=-1)
    attn = jnp.einsum("bhqk,bhkd->bhqd", probs, Vp)
    attn = attn.transpose(0, 2, 1, 3).reshape(B, S, D)
    return lin(attn, params["W_o"], params["b_o"])


if __name__ == "__main__":
    # Small but MXU/lane-friendly shapes: d_model multiple of 128, d_k = 128.
    d_model = 256
    num_heads = 2
    batch = 2
    seq = 128

    key = jax.random.PRNGKey(0)
    keys = jax.random.split(key, 11)
    bound = 1.0 / math.sqrt(d_model)

    def u(k, shape):
        return jax.random.uniform(k, shape, jnp.float32, -bound, bound)

    params = {
        "W_q": u(keys[0], (d_model, d_model)), "b_q": u(keys[1], (d_model,)),
        "W_k": u(keys[2], (d_model, d_model)), "b_k": u(keys[3], (d_model,)),
        "W_v": u(keys[4], (d_model, d_model)), "b_v": u(keys[5], (d_model,)),
        "W_o": u(keys[6], (d_model, d_model)), "b_o": u(keys[7], (d_model,)),
    }
    Q = jax.random.normal(keys[8], (batch, seq, d_model), jnp.float32)
    K = jax.random.normal(keys[9], (batch, seq, d_model), jnp.float32)
    V = jax.random.normal(keys[10], (batch, seq, d_model), jnp.float32)

    # --- cross-attention, f32 MXU path (matches the PyTorch module closely) ---
    ref = reference_mha(Q, K, V, params, num_heads=num_heads)
    out_f32 = jax.block_until_ready(
        multi_head_attention(Q, K, V, params, num_heads=num_heads,
                             compute_dtype=jnp.float32))
    assert out_f32.shape == (batch, seq, d_model)
    assert jnp.allclose(out_f32, ref, atol=2e-3, rtol=2e-3), \
        "Pallas f32 output mismatch vs reference"

    # --- cross-attention, bf16 MXU-operand / f32-accumulate fast path ---
    out_bf16 = jax.block_until_ready(
        multi_head_attention(Q, K, V, params, num_heads=num_heads,
                             compute_dtype=jnp.bfloat16))
    assert out_bf16.shape == (batch, seq, d_model)
    assert jnp.allclose(out_bf16, ref, atol=2e-2, rtol=2e-2), \
        "Pallas bf16 output mismatch vs reference"

    # --- self-attention dedup path (Q is K is V -> single HBM read in kernel 1) ---
    ref_self = reference_mha(Q, Q, Q, params, num_heads=num_heads)
    out_self = jax.block_until_ready(
        multi_head_attention(Q, Q, Q, params, num_heads=num_heads,
                             compute_dtype=jnp.float32))
    assert out_self.shape == (batch, seq, d_model)
    assert jnp.allclose(out_self, ref_self, atol=2e-3, rtol=2e-3), \
        "Pallas self-attention output mismatch vs reference"

    print("KERNEL_OK")
</pallas_src>

<mosaic_0001>
module attributes {stable_mosaic.version = 11 : i64} {
  func.func @_qkv_proj_kernel(%arg0: i32, %arg1: i32, %arg2: memref<1x128x256xf32, #tpu.memory_space<vmem>>, %arg3: memref<1x128x256xf32, #tpu.memory_space<vmem>>, %arg4: memref<1x128x256xf32, #tpu.memory_space<vmem>>, %arg5: memref<3x256x256xf32, #tpu.memory_space<vmem>>, %arg6: memref<3x1x256xf32, #tpu.memory_space<vmem>>, %arg7: memref<1x2x128x128xf32, #tpu.memory_space<vmem>>, %arg8: memref<1x2x128x128xf32, #tpu.memory_space<vmem>>, %arg9: memref<1x2x128x128xf32, #tpu.memory_space<vmem>>) attributes {dimension_semantics = [#tpu.dimension_semantics<parallel>, #tpu.dimension_semantics<parallel>], iteration_bounds = array<i64: 2, 1>, scalar_prefetch = 0 : i64, scratch_operands = 0 : i64, tpu.core_type = #tpu.core_type<tc>, window_params = [{transform_indices = @transform_0, window_bounds = array<i64: 1, 128, 256>}, {transform_indices = @transform_1, window_bounds = array<i64: 1, 128, 256>}, {transform_indices = @transform_2, window_bounds = array<i64: 1, 128, 256>}, {pipeline_mode = #tpu.pipeline_mode<synchronous>, transform_indices = @transform_3, window_bounds = array<i64: 3, 256, 256>}, {pipeline_mode = #tpu.pipeline_mode<synchronous>, transform_indices = @transform_4, window_bounds = array<i64: 3, 1, 256>}, {transform_indices = @transform_5, window_bounds = array<i64: 1, 2, 128, 128>}, {transform_indices = @transform_6, window_bounds = array<i64: 1, 2, 128, 128>}, {transform_indices = @transform_7, window_bounds = array<i64: 1, 2, 128, 128>}]} {
    %c0 = arith.constant 0 : index
    %c0_0 = arith.constant 0 : index
    %c0_1 = arith.constant 0 : index
    %0 = vector.load %arg2[%c0, %c0_0, %c0_1] : memref<1x128x256xf32, #tpu.memory_space<vmem>>, vector<1x128x256xf32>
    %1 = vector.shape_cast %0 : vector<1x128x256xf32> to vector<128x256xf32>
    %c0_2 = arith.constant 0 : index
    %c0_3 = arith.constant 0 : index
    %c0_4 = arith.constant 0 : index
    %2 = vector.load %arg5[%c0_2, %c0_3, %c0_4] : memref<3x256x256xf32, #tpu.memory_space<vmem>>, vector<1x256x256xf32>
    %3 = vector.shape_cast %2 : vector<1x256x256xf32> to vector<256x256xf32>
    %cst = arith.constant dense<0.000000e+00> : vector<128x256xf32>
    %4 = tpu.matmul %1, %3, %cst {dimension_numbers = #tpu.dot_dimension_numbers<[1], [0], [0], [1], [0, 0, 1, 1], [], []>} : vector<128x256xf32>, vector<256x256xf32>, vector<128x256xf32> -> vector<128x256xf32>
    %c0_5 = arith.constant 0 : index
    %c0_6 = arith.constant 0 : index
    %c0_7 = arith.constant 0 : index
    %5 = vector.load %arg6[%c0_5, %c0_6, %c0_7] : memref<3x1x256xf32, #tpu.memory_space<vmem>>, vector<1x1x256xf32>
    %6 = vector.shape_cast %5 : vector<1x1x256xf32> to vector<1x256xf32>
    %7 = vector.broadcast %6 : vector<1x256xf32> to vector<128x256xf32>
    %8 = arith.addf %4, %7 : vector<128x256xf32>
    %9 = vector.extract_strided_slice %8 {offsets = [0, 0], sizes = [128, 128], strides = [1, 1]} : vector<128x256xf32> to vector<128x128xf32>
    %c0_8 = arith.constant 0 : index
    %c0_9 = arith.constant 0 : index
    %c0_10 = arith.constant 0 : index
    %c0_11 = arith.constant 0 : index
    %10 = vector.load %arg7[%c0_8, %c0_9, %c0_10, %c0_11] : memref<1x2x128x128xf32, #tpu.memory_space<vmem>>, vector<1x1x128x128xf32>
    %11 = vector.shape_cast %10 : vector<1x1x128x128xf32> to vector<128x128xf32>
    %12 = vector.shape_cast %9 : vector<128x128xf32> to vector<1x1x128x128xf32>
    tpu.vector_store %arg7[%c0_8, %c0_9, %c0_10, %c0_11], %12 {strides = array<i32>} : memref<1x2x128x128xf32, #tpu.memory_space<vmem>>, vector<1x1x128x128xf32>,
    %13 = vector.extract_strided_slice %8 {offsets = [0, 128], sizes = [128, 128], strides = [1, 1]} : vector<128x256xf32> to vector<128x128xf32>
    %c0_12 = arith.constant 0 : index
    %c1 = arith.constant 1 : index
    %c0_13 = arith.constant 0 : index
    %c0_14 = arith.constant 0 : index
    %14 = vector.load %arg7[%c0_12, %c1, %c0_13, %c0_14] : memref<1x2x128x128xf32, #tpu.memory_space<vmem>>, vector<1x1x128x128xf32>
    %15 = vector.shape_cast %14 : vector<1x1x128x128xf32> to vector<128x128xf32>
    %16 = vector.shape_cast %13 : vector<128x128xf32> to vector<1x1x128x128xf32>
    tpu.vector_store %arg7[%c0_12, %c1, %c0_13, %c0_14], %16 {strides = array<i32>} : memref<1x2x128x128xf32, #tpu.memory_space<vmem>>, vector<1x1x128x128xf32>,
    %c0_15 = arith.constant 0 : index
    %c0_16 = arith.constant 0 : index
    %c0_17 = arith.constant 0 : index
    %17 = vector.load %arg3[%c0_15, %c0_16, %c0_17] : memref<1x128x256xf32, #tpu.memory_space<vmem>>, vector<1x128x256xf32>
    %18 = vector.shape_cast %17 : vector<1x128x256xf32> to vector<128x256xf32>
    %c1_18 = arith.constant 1 : index
    %c0_19 = arith.constant 0 : index
    %c0_20 = arith.constant 0 : index
    %19 = vector.load %arg5[%c1_18, %c0_19, %c0_20] : memref<3x256x256xf32, #tpu.memory_space<vmem>>, vector<1x256x256xf32>
    %20 = vector.shape_cast %19 : vector<1x256x256xf32> to vector<256x256xf32>
    %cst_21 = arith.constant dense<0.000000e+00> : vector<128x256xf32>
    %21 = tpu.matmul %18, %20, %cst_21 {dimension_numbers = #tpu.dot_dimension_numbers<[1], [0], [0], [1], [0, 0, 1, 1], [], []>} : vector<128x256xf32>, vector<256x256xf32>, vector<128x256xf32> -> vector<128x256xf32>
    %c1_22 = arith.constant 1 : index
    %c0_23 = arith.constant 0 : index
    %c0_24 = arith.constant 0 : index
    %22 = vector.load %arg6[%c1_22, %c0_23, %c0_24] : memref<3x1x256xf32, #tpu.memory_space<vmem>>, vector<1x1x256xf32>
    %23 = vector.shape_cast %22 : vector<1x1x256xf32> to vector<1x256xf32>
    %24 = vector.broadcast %23 : vector<1x256xf32> to vector<128x256xf32>
    %25 = arith.addf %21, %24 : vector<128x256xf32>
    %26 = vector.extract_strided_slice %25 {offsets = [0, 0], sizes = [128, 128], strides = [1, 1]} : vector<128x256xf32> to vector<128x128xf32>
    %c0_25 = arith.constant 0 : index
    %c0_26 = arith.constant 0 : index
    %c0_27 = arith.constant 0 : index
    %c0_28 = arith.constant 0 : index
    %27 = vector.load %arg8[%c0_25, %c0_26, %c0_27, %c0_28] : memref<1x2x128x128xf32, #tpu.memory_space<vmem>>, vector<1x1x128x128xf32>
    %28 = vector.shape_cast %27 : vector<1x1x128x128xf32> to vector<128x128xf32>
    %29 = vector.shape_cast %26 : vector<128x128xf32> to vector<1x1x128x128xf32>
    tpu.vector_store %arg8[%c0_25, %c0_26, %c0_27, %c0_28], %29 {strides = array<i32>} : memref<1x2x128x128xf32, #tpu.memory_space<vmem>>, vector<1x1x128x128xf32>,
    %30 = vector.extract_strided_slice %25 {offsets = [0, 128], sizes = [128, 128], strides = [1, 1]} : vector<128x256xf32> to vector<128x128xf32>
    %c0_29 = arith.constant 0 : index
    %c1_30 = arith.constant 1 : index
    %c0_31 = arith.constant 0 : index
    %c0_32 = arith.constant 0 : index
    %31 = vector.load %arg8[%c0_29, %c1_30, %c0_31, %c0_32] : memref<1x2x128x128xf32, #tpu.memory_space<vmem>>, vector<1x1x128x128xf32>
    %32 = vector.shape_cast %31 : vector<1x1x128x128xf32> to vector<128x128xf32>
    %33 = vector.shape_cast %30 : vector<128x128xf32> to vector<1x1x128x128xf32>
    tpu.vector_store %arg8[%c0_29, %c1_30, %c0_31, %c0_32], %33 {strides = array<i32>} : memref<1x2x128x128xf32, #tpu.memory_space<vmem>>, vector<1x1x128x128xf32>,
    %c0_33 = arith.constant 0 : index
    %c0_34 = arith.constant 0 : index
    %c0_35 = arith.constant 0 : index
    %34 = vector.load %arg4[%c0_33, %c0_34, %c0_35] : memref<1x128x256xf32, #tpu.memory_space<vmem>>, vector<1x128x256xf32>
    %35 = vector.shape_cast %34 : vector<1x128x256xf32> to vector<128x256xf32>
    %c2 = arith.constant 2 : index
    %c0_36 = arith.constant 0 : index
    %c0_37 = arith.constant 0 : index
    %36 = vector.load %arg5[%c2, %c0_36, %c0_37] : memref<3x256x256xf32, #tpu.memory_space<vmem>>, vector<1x256x256xf32>
    %37 = vector.shape_cast %36 : vector<1x256x256xf32> to vector<256x256xf32>
    %cst_38 = arith.constant dense<0.000000e+00> : vector<128x256xf32>
    %38 = tpu.matmul %35, %37, %cst_38 {dimension_numbers = #tpu.dot_dimension_numbers<[1], [0], [0], [1], [0, 0, 1, 1], [], []>} : vector<128x256xf32>, vector<256x256xf32>, vector<128x256xf32> -> vector<128x256xf32>
    %c2_39 = arith.constant 2 : index
    %c0_40 = arith.constant 0 : index
    %c0_41 = arith.constant 0 : index
    %39 = vector.load %arg6[%c2_39, %c0_40, %c0_41] : memref<3x1x256xf32, #tpu.memory_space<vmem>>, vector<1x1x256xf32>
    %40 = vector.shape_cast %39 : vector<1x1x256xf32> to vector<1x256xf32>
    %41 = vector.broadcast %40 : vector<1x256xf32> to vector<128x256xf32>
    %42 = arith.addf %38, %41 : vector<128x256xf32>
    %43 = vector.extract_strided_slice %42 {offsets = [0, 0], sizes = [128, 128], strides = [1, 1]} : vector<128x256xf32> to vector<128x128xf32>
    %c0_42 = arith.constant 0 : index
    %c0_43 = arith.constant 0 : index
    %c0_44 = arith.constant 0 : index
    %c0_45 = arith.constant 0 : index
    %44 = vector.load %arg9[%c0_42, %c0_43, %c0_44, %c0_45] : memref<1x2x128x128xf32, #tpu.memory_space<vmem>>, vector<1x1x128x128xf32>
    %45 = vector.shape_cast %44 : vector<1x1x128x128xf32> to vector<128x128xf32>
    %46 = vector.shape_cast %43 : vector<128x128xf32> to vector<1x1x128x128xf32>
    tpu.vector_store %arg9[%c0_42, %c0_43, %c0_44, %c0_45], %46 {strides = array<i32>} : memref<1x2x128x128xf32, #tpu.memory_space<vmem>>, vector<1x1x128x128xf32>,
    %47 = vector.extract_strided_slice %42 {offsets = [0, 128], sizes = [128, 128], strides = [1, 1]} : vector<128x256xf32> to vector<128x128xf32>
    %c0_46 = arith.constant 0 : index
    %c1_47 = arith.constant 1 : index
    %c0_48 = arith.constant 0 : index
    %c0_49 = arith.constant 0 : index
    %48 = vector.load %arg9[%c0_46, %c1_47, %c0_48, %c0_49] : memref<1x2x128x128xf32, #tpu.memory_space<vmem>>, vector<1x1x128x128xf32>
    %49 = vector.shape_cast %48 : vector<1x1x128x128xf32> to vector<128x128xf32>
    %50 = vector.shape_cast %47 : vector<128x128xf32> to vector<1x1x128x128xf32>
    tpu.vector_store %arg9[%c0_46, %c1_47, %c0_48, %c0_49], %50 {strides = array<i32>} : memref<1x2x128x128xf32, #tpu.memory_space<vmem>>, vector<1x1x128x128xf32>,
    return
  }
  func.func @transform_0(%arg0: i32, %arg1: i32) -> (i32, i32, i32) {
    %c0_i32 = arith.constant 0 : i32
    %c0_i32_0 = arith.constant 0 : i32
    return %arg0, %arg1, %c0_i32 : i32, i32, i32
  }
  func.func @transform_1(%arg0: i32, %arg1: i32) -> (i32, i32, i32) {
    %c0_i32 = arith.constant 0 : i32
    %c0_i32_0 = arith.constant 0 : i32
    return %arg0, %arg1, %c0_i32 : i32, i32, i32
  }
  func.func @transform_2(%arg0: i32, %arg1: i32) -> (i32, i32, i32) {
    %c0_i32 = arith.constant 0 : i32
    %c0_i32_0 = arith.constant 0 : i32
    return %arg0, %arg1, %c0_i32 : i32, i32, i32
  }
  func.func @transform_3(%arg0: i32, %arg1: i32) -> (i32, i32, i32) {
    %c0_i32 = arith.constant 0 : i32
    %c0_i32_0 = arith.constant 0 : i32
    %c0_i32_1 = arith.constant 0 : i32
    %c0_i32_2 = arith.constant 0 : i32
    return %c0_i32, %c0_i32_0, %c0_i32_1 : i32, i32, i32
  }
  func.func @transform_4(%arg0: i32, %arg1: i32) -> (i32, i32, i32) {
    %c0_i32 = arith.constant 0 : i32
    %c0_i32_0 = arith.constant 0 : i32
    %c0_i32_1 = arith.constant 0 : i32
    %c0_i32_2 = arith.constant 0 : i32
    return %c0_i32, %c0_i32_0, %c0_i32_1 : i32, i32, i32
  }
  func.func @transform_5(%arg0: i32, %arg1: i32) -> (i32, i32, i32, i32) {
    %c0_i32 = arith.constant 0 : i32
    %c0_i32_0 = arith.constant 0 : i32
    %c0_i32_1 = arith.constant 0 : i32
    return %arg0, %c0_i32, %arg1, %c0_i32_0 : i32, i32, i32, i32
  }
  func.func @transform_6(%arg0: i32, %arg1: i32) -> (i32, i32, i32, i32) {
    %c0_i32 = arith.constant 0 : i32
    %c0_i32_0 = arith.constant 0 : i32
    %c0_i32_1 = arith.constant 0 : i32
    return %arg0, %c0_i32, %arg1, %c0_i32_0 : i32, i32, i32, i32
  }
  func.func @transform_7(%arg0: i32, %arg1: i32) -> (i32, i32, i32, i32) {
    %c0_i32 = arith.constant 0 : i32
    %c0_i32_0 = arith.constant 0 : i32
    %c0_i32_1 = arith.constant 0 : i32
    return %arg0, %c0_i32, %arg1, %c0_i32_0 : i32, i32, i32, i32
  }
}

</mosaic_0001>

<bundles_post_ra>
// kernel: tpu_custom_call.1
= control target key start
LH: loop header
LB: loop body
LE: loop exit
PB: predicated region body
PF: predicated region fallthrough
CT: control target
= control target key end

     0   :  { %s3066_s0 = inlined_call_operand.hbm [shape: f32[2,128,256], index: 0, kind: input, shape index: {}]   ;;  %s3067_s1 = inlined_call_operand.hbm [shape: f32[2,128,256], index: 1, kind: input, shape index: {}]   ;;  %s3068_s2 = inlined_call_operand.hbm [shape: f32[2,128,256], index: 2, kind: input, shape index: {}]   ;;  %s3069_s3 = inlined_call_operand.hbm [shape: f32[3,256,256], index: 3, kind: input, shape index: {}]   ;;  %s3070_s4 = inlined_call_operand.hbm [shape: f32[3,1,256], index: 4, kind: input, shape index: {}]   ;;  %s3071_s5 = inlined_call_operand.hbm [shape: f32[2,2,128,128], index: 5, kind: output, shape index: {0}]   ;;  %s3072_s6 = inlined_call_operand.hbm [shape: f32[2,2,128,128], index: 6, kind: output, shape index: {1}]   ;;  %s3073_s7 = inlined_call_operand.hbm [shape: f32[2,2,128,128], index: 7, kind: output, shape index: {2}]  }
   0x1   :  { %3087 = sst [smem:[#allocation27_spill]] %s3067_s1 }
   0x2   :  { %3088 = sst [smem:[#allocation28_spill]] %s3069_s3 }
   0x3   :  { %3089 = sst [smem:[#allocation29_spill]] %s3070_s4 }
   0x4   :  { %3090 = sst [smem:[#allocation30_spill]] %s3073_s7 }
   0x5   :  { %13 = vsyncpa [#allocation3], 0 }
   0x6   :  { %15 = vsyncpa [#allocation3 + $0x1], 0 }
   0x7   :  { %16 = vsyncpa [#allocation6], 0 }
   0x8   :  { %18 = vsyncpa [#allocation6 + $0x1], 0 }
   0x9   :  { %19 = vsyncpa [#allocation9], 0 }
   0xa   :  { %20 = vsyncpa [#allocation4], 0 }
   0xb   :  { %22 = vsyncpa [#allocation4 + $0x1], 0 }
   0xc   :  { %23 = vsyncpa [#allocation13], 0 }
   0xd   :  { %25 = vsyncpa [#allocation13 + $0x1], 0  ;;  %s2497_s24 = smov 0   ;;  %s2499_s25 = smov 0  }
   0xe   :  { %s2501_s26 = smov 0   ;;  %s2503_s27 = smov 0  }
   0xf   :  { %s2505_s28 = smov 0   ;;  %s2507_s29 = smov 0  }
  0x10 LB: > { %3091 = sst [smem:[#allocation20_spill]] %s2427_s24  ;;  %s2528_s30 = sadd.s32 4294967295, %s2447_s29   ;;  %s2447_s29 = sphi %s2507_s29, %s31_s29   ;;  %s2443_s28 = sphi %s2505_s28, %s3117_s28   ;;  %s2439_s27 = sphi %s2503_s27, %s3120_s27   ;;  %s2435_s26 = sphi %s2501_s26, %s3115_s26   ;;  %s2431_s25 = sphi %s2499_s25, %s3119_s25   ;;  %s2427_s24 = sphi %s2497_s24, %s3118_s24  }
  0x11   : > { %3092 = sst [smem:[#allocation21_spill]] %s2435_s26  ;;  %s3074_s8 = sadd.s32 4294967294, %s2447_s29  }
  0x12   : > { %3093 = sst [smem:[#allocation22_spill]] %s2443_s28  ;;  %p65_p0 = scmp.ne.s32.totalorder %s2431_s25, %s2427_s24 }
  0x13   : > { %3094 = sst [smem:[#allocation23_spill]] %s2447_s29  ;;  %p66_p1 = scmp.eq.s32.totalorder %s2528_s30, 0 }
  0x14   : > { %p189_p2 = scmp.eq.s32.totalorder %s2528_s30, 1  ;;  %p195_p3 = scmp.eq.s32.totalorder %s3074_s8, 1 }
  0x15   : > { %p2539_p4 = por %p66_p1, %p65_p0  ;;  %p1951_p5 = scmp.ge.s32.totalorder %s2447_s29, 1 }
  0x16   : > { %p2544_p6 = por %p195_p3, %p65_p0  ;;  %p258_p7 = scmp.lt.s32.totalorder %s2447_s29, 3 }
  0x17   : > { %s3098_s3 = sld [smem:[#allocation28_spill]]  ;;  %s2449_s15 = smov [#allocation8]  }
  0x18   : > { %s3096_s10 = scalar_select %p2544_p6, 1, 0 }
  0x19   : > { %p2552_p8 = pnand %p1951_p5, %p258_p7  ;;  %s271_s16 = sshll.u32 %s2449_s15, 4  ;;  %s272_s16 = int_to_ptr.vmem [resolvable:$true] %s271_s16 }
  0x1a   : > { %3097 = sst [smem:[#allocation24_spill]] %s3096_s10  ;;  %p1954_p11 = scmp.ge.s32.totalorder %s2447_s29, 2 }
  0x1b   : > { %p2058_p9 = pneg %p2552_p8  ;;  %s3075_s18 = smov 256  }
  0x1c   : > { %s3077_s19 = smov 16   ;;  %s43_s20 = sadd.s32 1, %s2443_s28 }
  0x1d   : > { %s269_s13 = sshll.u32 %s3098_s3, 4  ;;  %p2560_p10 = pnand %p2058_p9, %p66_p1  ;;  %s270_s13 = int_to_ptr.hbm [resolvable:$true] %s269_s13 }
  0x1e   : > { %p45_p12 = scmp.ge.s32.totalorder %s43_s20, 2  ;;  %s52_s21 = sadd.s32 1, %s2435_s26 }
  0x1f   : > { %2061 = dma.hbm_to_vmem [thread:$0]  (!%p2560_p10), %s270_s13, 24576, %s272_s16, [#allocation9], %s3075_s18, %s3075_s18, %s3077_s19  }
  0x20   : > { %p59_p13 = scmp.ne.s32.totalorder %s2435_s26, %s2431_s25  ;;  %p60_p0 = scmp.eq.s32.totalorder %s2447_s29, 0 }
  0x21   : > { %s3122_s20 = smov (%p45_p12, %s43_s20), 0  ;;  %p2087_p7 = scmp.lt.s32.totalorder %s2447_s29, 2 }
  0x22   : > { %3101 = sst [smem:[#allocation25_spill]] %s3122_s20  ;;  %p61_p3 = por %p60_p0, %p59_p13 }
  0x23   : > { %p2579_p5 = por %p189_p2, %p59_p13  ;;  %s47_s23 = ssub.s32 %s2443_s28, %s3122_s20 }
  0x24   : > { %p50_p9 = scmp.eq.s32.totalorder %s47_s23, 0  ;;  %s299_s11 = sand.u32 1, %s2435_s26  }
  0x25   : > { %s2587_s12 = sshll.u32 %s299_s11, 8  ;;  %s2590_s13 = sshll.u32 %s2443_s28, 8 }
  0x26   : > { %s2593_s15 = scalar_select %p50_p9, %s2435_s26, %s52_s21  }
  0x27   : > { %p2595_p12 = pnand %p2087_p7, %p61_p3  ;;  %s324_s8 = sand.u32 1, %s2447_s29  }
  0x28   : > { %3103 = sst [smem:[#allocation26_spill]] %s2593_s15  ;;  %s328_s20 = scalar_lea.vmem [#allocation5], %s2587_s12 }
  0x29   : > { %s3105_s1 = sld [smem:[#allocation27_spill]]  ;;  %s339_s28 = sshll.u32 %s328_s20, 4  ;;  %s340_s28 = int_to_ptr.vmem [resolvable:$true] %s339_s28 }
  0x2a   : > { %s325_s21 = scalar_lea.sflag [#allocation6], %s324_s8  ;;  %s3106_s15 = smov 16  }
  0x2b   : > { %s3107_s26 = smov 256   ;;  %s3108_s4 = sld [smem:[#allocation29_spill]] }
  0x2c   : > { %s2452_s19 = smov [#allocation10]   ;;  %s2453_s20 = smov 32  }
  0x2d   : > { %s303_s7 = scalar_lea.vmem [#allocation2], %s2587_s12  ;;  %s300_s10 = scalar_lea.sflag [#allocation3], %s299_s11 }
  0x2e   : > { %s314_s29 = sshll.u32 %s303_s7, 4  ;;  %s361_s17 = scalar_lea.hbm %s3068_s2, %s2590_s13  ;;  %s315_s29 = int_to_ptr.vmem [resolvable:$true] %s314_s29 }
  0x2f   : > { %s336_s23 = scalar_lea.hbm %s3105_s1, %s2590_s13  ;;  %s2454_s1 = smov 2  }
  0x30   : > { %s337_s3 = sshll.u32 %s336_s23, 4  ;;  %s285_s23 = sshll.u32 %s2452_s19, 4  ;;  %s338_s3 = int_to_ptr.hbm [resolvable:$true] %s337_s3  ;;  %s286_s23 = int_to_ptr.vmem [resolvable:$true] %s285_s23 }
  0x31   : > { %2071 = dma.hbm_to_vmem [thread:$0]  (!%p2595_p12), %s338_s3, 4096, %s340_s28, %s325_s21, %s3107_s26, %s3107_s26, %s3106_s15  }
  0x32   : > { %s283_s18 = sshll.u32 %s3108_s4, 4  ;;  %s311_s3 = scalar_lea.hbm %s3066_s0, %s2590_s13  ;;  %s284_s18 = int_to_ptr.hbm [resolvable:$true] %s283_s18 }
  0x33   : > { %2064 = dma.hbm_to_vmem [thread:$0]  (!%p2560_p10), %s284_s18, 96, %s286_s23, [#allocation9], %s2453_s20, %s2453_s20, %s2454_s1  }
  0x34   : > { %s312_s28 = sshll.u32 %s311_s3, 4  ;;  %s362_s1 = sshll.u32 %s361_s17, 4  ;;  %s313_s28 = int_to_ptr.hbm [resolvable:$true] %s312_s28  ;;  %s363_s1 = int_to_ptr.hbm [resolvable:$true] %s362_s1 }
  0x35   : > { %2068 = dma.hbm_to_vmem [thread:$0]  (!%p2595_p12), %s313_s28, 4096, %s315_s29, %s300_s10, %s3107_s26, %s3107_s26, %s3106_s15  }
  0x36   : > { %s353_s18 = scalar_lea.vmem [#allocation7], %s2587_s12  ;;  %376 = sbr.rel (%p2552_p8) target bundleno = 622 (0x26e), region = 40 }
  0x37   : > { %s364_s23 = sshll.u32 %s353_s18, 4  ;;  %s2638_s7 = sand.u32 (!%p2552_p8), 1, %s2431_s25   ;;  %s365_s23 = int_to_ptr.vmem [resolvable:$true] %s364_s23 }
  0x38   : > { %2074 = dma.hbm_to_vmem [thread:$0]  (!%p2595_p12), %s363_s1, 4096, %s365_s23, %s325_s21, %s3107_s26, %s3107_s26, %s3106_s15  }
  0x39   : > { %s2641_s4 = sshll.u32 (!%p2552_p8), %s2638_s7, 8  ;;  %s379_s24 = scalar_lea.sflag (!%p2552_p8), [#allocation3], %s2638_s7 }
  0x3a   : > { %s2645_s11 = scalar_lea.vmem (!%p2552_p8), [#allocation2], %s2641_s4 }
  0x3b   : > { %2406 = dma.done.wait (%p2539_p4), %s379_s24, 4096  }
  0x3c   : > { %2408 = vsyncadd (%p2539_p4), %s379_s24, 4294963200  ;;  %s388_s26 = sand.u32 1, %s2528_s30   ;;  %s2655_s12 = scalar_lea.vmem [#allocation5], %s2641_s4 }
  0x3d   : > { %s389_s14 = scalar_lea.sflag [#allocation6], %s388_s26 }
  0x3e   : > { %2410 = dma.done.wait (%p2539_p4), %s389_s14, 8192  }
  0x3f   : > { %2412 = vsyncadd (%p2539_p4), %s389_s14, 4294959104  ;;  %s2662_s13 = scalar_lea.vmem [#allocation7], %s2641_s4 }
  0x40   : > { %2414 = dma.done.wait (%p66_p1), [#allocation9], 24672  }
  0x41   : > { %2416 = vsyncadd (%p66_p1), [#allocation9], 4294942624  ;;  %v533_v0 = vld [vmem:[#allocation8 + $0xf8] sm:$0xff]  ;;  %v531_v1 = vld [vmem:[#allocation8 + $0xe8] sm:$0xff]  ;;  %s2709_s9 = scalar_lea.vmem [#allocation11], %s2641_s4  ;;  %s2812_s15 = scalar_lea.vmem [#allocation12], %s2641_s4 }
  0x42   : > { %v565_v2 = vld [vmem:[#allocation8 + $0x1f8] sm:$0xff]  ;;  %702 = vmatpush.msra.mxu2 %v533_v0  ;;  %v563_v3 = vld [vmem:[#allocation8 + $0x1e8] sm:$0xff]  ;;  %v532_v4 = vld [vmem:[#allocation8 + $0xf0] sm:$0xff]  ;;  %s2905_s16 = sshll.u32 %s2439_s27, 8  ;;  %s1703_s3 = sshll.u32 %s2812_s15, 4  ;;  %s1704_s3 = int_to_ptr.vmem [resolvable:$true] %s1703_s3 }
  0x43   : > { %767 = vmatpush.msra.mxu3 %v565_v2  ;;  %v529_v5 = vld [vmem:[#allocation8 + $0xd8] sm:$0xff]  ;;  %572 = vmatpush.msra.mxu0 %v532_v4  ;;  %v530_v7 = vld [vmem:[#allocation8 + $0xe0] sm:$0xff]  ;;  %v527_v8 = vld [vmem:[#allocation8 + $0xc8] sm:$0xff]  ;;  %s1702_s8 = scalar_lea.hbm %s3072_s6, %s2905_s16  ;;  %s2921_s27 = scalar_lea.sflag [#allocation13], %s388_s26 }
  0x44   : > { %v561_v6 = vld [vmem:[#allocation8 + $0x1d8] sm:$0xff]  ;;  %703 = vmatpush.msra.mxu2 %v531_v1  ;;  %v564_v9 = vld [vmem:[#allocation8 + $0x1f0] sm:$0xff]  ;;  %v559_v10 = vld [vmem:[#allocation8 + $0x1c8] sm:$0xff]  ;;  %s1705_s28 = sshll.u32 %s1702_s8, 4  ;;  %s2317_s1 = scalar_lea.hbm %s3072_s6, 512  ;;  %s1706_s28 = int_to_ptr.hbm [resolvable:$true] %s1705_s28 }
  0x45   : > { %768 = vmatpush.msra.mxu3 %v563_v3  ;;  %573 = vmatpush.msra.mxu0 %v530_v7  ;;  %v528_v11 = vld [vmem:[#allocation8 + $0xd0] sm:$0xff]  ;;  %v562_v12 = vld [vmem:[#allocation8 + $0x1e0] sm:$0xff]  ;;  %v525_v15 = vld [vmem:[#allocation8 + $0xb8] sm:$0xff]  ;;  %s2311_s29 = sshra.s32 %s1706_s28, 4  ;;  %s2312_s29 = int_to_ptr.hbm [resolvable:$true] %s2311_s29 }
  0x46   : > { %637 = vmatpush.msra.mxu1 %v564_v9  ;;  %704 = vmatpush.msra.mxu2 %v529_v5  ;;  %v526_v13 = vld [vmem:[#allocation8 + $0xc0] sm:$0xff]  ;;  %v560_v14 = vld [vmem:[#allocation8 + $0x1d0] sm:$0xff]  ;;  %v557_v16 = vld [vmem:[#allocation8 + $0x1b8] sm:$0xff]  ;;  %s2313_s10 = scalar_lea.hbm %s2312_s29, 256  ;;  %p2318_p8 = scmp.lt.s32.totalorder %s2312_s29, %s3072_s6 }
  0x47   : > { %769 = vmatpush.msra.mxu3 %v561_v6  ;;  %574 = vmatpush.msra.mxu0 %v528_v11  ;;  %v524_v17 = vld [vmem:[#allocation8 + $0xb0] sm:$0xff]  ;;  %v558_v18 = vld [vmem:[#allocation8 + $0x1c0] sm:$0xff]  ;;  %v523_v19 = vld [vmem:[#allocation8 + $0xa8] sm:$0xff]  ;;  %p2314_p1 = scmp.ne.s32.totalorder %s2312_s29, %s2313_s10  ;;  %p2319_p10 = scmp.lt.s32.totalorder %s2317_s1, %s2313_s10 }
  0x48   : > { %638 = vmatpush.msra.mxu1 %v562_v12  ;;  %705 = vmatpush.msra.mxu2 %v527_v8  ;;  %v555_v20 = vld [vmem:[#allocation8 + $0x1a8] sm:$0xff]  ;;  %v522_v21 = vld [vmem:[#allocation8 + $0xa0] sm:$0xff]  ;;  %v556_v22 = vld [vmem:[#allocation8 + $0x1b0] sm:$0xff] }
  0x49   : > { %770 = vmatpush.msra.mxu3 %v559_v10  ;;  %575 = vmatpush.msra.mxu0 %v526_v13  ;;  %v521_v23 = vld [vmem:[#allocation8 + $0x98] sm:$0xff]  ;;  %v520_v25 = vld [vmem:[#allocation8 + $0x90] sm:$0xff]  ;;  %v554_v26 = vld [vmem:[#allocation8 + $0x1a0] sm:$0xff]  ;;  %p2315_p2 = pnand %p2314_p1, %p2579_p5  ;;  %p2320_p13 = por %p2319_p10, %p2318_p8 }
  0x4a   : > { %639 = vmatpush.msra.mxu1 %v560_v14  ;;  %706 = vmatpush.msra.mxu2 %v525_v15  ;;  %v553_v24 = vld [vmem:[#allocation8 + $0x198] sm:$0xff]  ;;  %v519_v27 = vld [vmem:[#allocation8 + $0x88] sm:$0xff]  ;;  %v518_v29 = vld [vmem:[#allocation8 + $0x80] sm:$0xff] }
  0x4b   : > { %771 = vmatpush.msra.mxu3 %v557_v16  ;;  %576 = vmatpush.msra.mxu0 %v524_v17  ;;  %v551_v28 = vld [vmem:[#allocation8 + $0x188] sm:$0xff]  ;;  %v552_v30 = vld [vmem:[#allocation8 + $0x190] sm:$0xff]  ;;  %v517_v31 = vld [vmem:[#allocation8 + $0x78] sm:$0xff]  ;;  %p2316_p4 = pneg %p2315_p2 }
  0x4c   : > { %640 = vmatpush.msra.mxu1 %v558_v18  ;;  %707 = vmatpush.msra.mxu2 %v523_v19  ;;  %v549_v32 = vld [vmem:[#allocation8 + $0x178] sm:$0xff]  ;;  %v516_v33 = vld [vmem:[#allocation8 + $0x70] sm:$0xff]  ;;  %v550_v34 = vld [vmem:[#allocation8 + $0x180] sm:$0xff] }
  0x4d   : > { %772 = vmatpush.msra.mxu3 %v555_v20  ;;  %577 = vmatpush.msra.mxu0 %v522_v21  ;;  %v515_v35 = vld [vmem:[#allocation8 + $0x68] sm:$0xff]  ;;  %v514_v37 = vld [vmem:[#allocation8 + $0x60] sm:$0xff]  ;;  %v548_v38 = vld [vmem:[#allocation8 + $0x170] sm:$0xff]  ;;  %p2321_p0 = pnand %p2320_p13, %p2316_p4 }
  0x4e   : > { %641 = vmatpush.msra.mxu1 %v556_v22  ;;  %708 = vmatpush.msra.mxu2 %v521_v23  ;;  %v547_v36 = vld [vmem:[#allocation8 + $0x168] sm:$0xff]  ;;  %v513_v39 = vld [vmem:[#allocation8 + $0x58] sm:$0xff]  ;;  %v512_v41 = vld [vmem:[#allocation8 + $0x50] sm:$0xff] }
  0x4f   : > { %773 = vmatpush.msra.mxu3 %v553_v24  ;;  %578 = vmatpush.msra.mxu0 %v520_v25  ;;  %v545_v40 = vld [vmem:[#allocation8 + $0x158] sm:$0xff]  ;;  %v546_v42 = vld [vmem:[#allocation8 + $0x160] sm:$0xff]  ;;  %v511_v43 = vld [vmem:[#allocation8 + $0x48] sm:$0xff] }
  0x50   : > { %642 = vmatpush.msra.mxu1 %v554_v26  ;;  %709 = vmatpush.msra.mxu2 %v519_v27  ;;  %v543_v44 = vld [vmem:[#allocation8 + $0x148] sm:$0xff]  ;;  %v510_v45 = vld [vmem:[#allocation8 + $0x40] sm:$0xff]  ;;  %v544_v46 = vld [vmem:[#allocation8 + $0x150] sm:$0xff] }
  0x51   : > { %774 = vmatpush.msra.mxu3 %v551_v28  ;;  %579 = vmatpush.msra.mxu0 %v518_v29  ;;  %v509_v47 = vld [vmem:[#allocation8 + $0x38] sm:$0xff]  ;;  %v508_v49 = vld [vmem:[#allocation8 + $0x30] sm:$0xff]  ;;  %v542_v50 = vld [vmem:[#allocation8 + $0x140] sm:$0xff] }
  0x52   : > { %643 = vmatpush.msra.mxu1 %v552_v30  ;;  %710 = vmatpush.msra.mxu2 %v517_v31  ;;  %v541_v48 = vld [vmem:[#allocation8 + $0x138] sm:$0xff]  ;;  %v507_v51 = vld [vmem:[#allocation8 + $0x28] sm:$0xff]  ;;  %v506_v53 = vld [vmem:[#allocation8 + $0x20] sm:$0xff] }
  0x53   : > { %775 = vmatpush.msra.mxu3 %v549_v32  ;;  %580 = vmatpush.msra.mxu0 %v516_v33  ;;  %v539_v52 = vld [vmem:[#allocation8 + $0x128] sm:$0xff]  ;;  %v540_v54 = vld [vmem:[#allocation8 + $0x130] sm:$0xff]  ;;  %v505_v55 = vld [vmem:[#allocation8 + $0x18] sm:$0xff] }
  0x54   : > { %644 = vmatpush.msra.mxu1 %v550_v34  ;;  %711 = vmatpush.msra.mxu2 %v515_v35  ;;  %v537_v56 = vld [vmem:[#allocation8 + $0x118] sm:$0xff]  ;;  %v504_v57 = vld [vmem:[#allocation8 + $0x10] sm:$0xff]  ;;  %v538_v58 = vld [vmem:[#allocation8 + $0x120] sm:$0xff] }
  0x55   : > { %776 = vmatpush.msra.mxu3 %v547_v36  ;;  %581 = vmatpush.msra.mxu0 %v514_v37  ;;  %v503_v59 = vld [vmem:[#allocation8 + $0x8] sm:$0xff]  ;;  %v470_v61 = vld [vmem:[%s2645_s11] sm:$0xff]  ;;  %v929_v63 = vld [vmem:[#allocation8 + $0x2f8] sm:$0xff] }
  0x56   : > { %645 = vmatpush.msra.mxu1 %v548_v38  ;;  %712 = vmatpush.msra.mxu2 %v513_v39  ;;  %v535_v60 = vld [vmem:[#allocation8 + $0x108] sm:$0xff]  ;;  %v961_v0 = vld [vmem:[#allocation8 + $0x3f8] sm:$0xff]  ;;  %v502_v1 = vld [vmem:[#allocation8] sm:$0xff] }
  0x57   : > { %777 = vmatpush.msra.mxu3 %v545_v40  ;;  %582 = vmatpush.msra.mxu0 %v512_v41  ;;  %v471_v62 = vld [vmem:[%s2645_s11 + $0x8] sm:$0xff]  ;;  %v536_v2 = vld [vmem:[#allocation8 + $0x110] sm:$0xff]  ;;  %v534_v5 = vld [vmem:[#allocation8 + $0x100] sm:$0xff] }
  0x58   : > { %646 = vmatpush.msra.mxu1 %v546_v42  ;;  %713 = vmatpush.msra.mxu2 %v511_v43  ;;  %v927_v3 = vld [vmem:[#allocation8 + $0x2e8] sm:$0xff]  ;;  %v928_v4 = vld [vmem:[#allocation8 + $0x2f0] sm:$0xff]  ;;  %v926_v8 = vld [vmem:[#allocation8 + $0x2e0] sm:$0xff] }
  0x59   : > { %778 = vmatpush.msra.mxu3 %v543_v44  ;;  %583 = vmatpush.msra.mxu0 %v510_v45  ;;  %v959_v6 = vld [vmem:[#allocation8 + $0x3e8] sm:$0xff]  ;;  %v960_v7 = vld [vmem:[#allocation8 + $0x3f0] sm:$0xff]  ;;  %v925_v9 = vld [vmem:[#allocation8 + $0x2d8] sm:$0xff] }
  0x5a   : > { %647 = vmatpush.msra.mxu1 %v544_v46  ;;  %714 = vmatpush.msra.mxu2 %v509_v47  ;;  %v957_v10 = vld [vmem:[#allocation8 + $0x3d8] sm:$0xff]  ;;  %v472_v11 = vld [vmem:[%s2645_s11 + $0x10] sm:$0xff]  ;;  %v958_v13 = vld [vmem:[#allocation8 + $0x3e0] sm:$0xff] }
  0x5b   : > { %779 = vmatpush.msra.mxu3 %v541_v48  ;;  %584 = vmatpush.msra.mxu0 %v508_v49  ;;  %v473_v12 = vld [vmem:[%s2645_s11 + $0x18] sm:$0xff]  ;;  %v924_v14 = vld [vmem:[#allocation8 + $0x2d0] sm:$0xff]  ;;  %v923_v15 = vld [vmem:[#allocation8 + $0x2c8] sm:$0xff] }
  0x5c   : > { %648 = vmatpush.msra.mxu1 %v542_v50  ;;  %715 = vmatpush.msra.mxu2 %v507_v51  ;;  %v955_v16 = vld [vmem:[#allocation8 + $0x3c8] sm:$0xff]  ;;  %v956_v17 = vld [vmem:[#allocation8 + $0x3d0] sm:$0xff]  ;;  %v922_v18 = vld [vmem:[#allocation8 + $0x2c0] sm:$0xff] }
  0x5d   : > { %780 = vmatpush.msra.mxu3 %v539_v52  ;;  %585 = vmatpush.msra.mxu0 %v506_v53  ;;  %v921_v19 = vld [vmem:[#allocation8 + $0x2b8] sm:$0xff]  ;;  %v954_v21 = vld [vmem:[#allocation8 + $0x3c0] sm:$0xff]  ;;  %v920_v22 = vld [vmem:[#allocation8 + $0x2b0] sm:$0xff] }
  0x5e   : > { %649 = vmatpush.msra.mxu1 %v540_v54  ;;  %716 = vmatpush.msra.mxu2 %v505_v55  ;;  %v953_v20 = vld [vmem:[#allocation8 + $0x3b8] sm:$0xff]  ;;  %v919_v23 = vld [vmem:[#allocation8 + $0x2a8] sm:$0xff]  ;;  %v474_v25 = vld [vmem:[%s2645_s11 + $0x20] sm:$0xff] }
  0x5f   : > { %781 = vmatpush.msra.mxu3 %v537_v56  ;;  %586 = vmatpush.msra.mxu0 %v504_v57  ;;  %v951_v24 = vld [vmem:[#allocation8 + $0x3a8] sm:$0xff]  ;;  %v952_v27 = vld [vmem:[#allocation8 + $0x3b0] sm:$0xff]  ;;  %v918_v28 = vld [vmem:[#allocation8 + $0x2a0] sm:$0xff] }
  0x60   : > { %650 = vmatpush.msra.mxu1 %v538_v58  ;;  %717 = vmatpush.msra.mxu2 %v503_v59  ;;  %v475_v26 = vld [vmem:[%s2645_s11 + $0x28] sm:$0xff]  ;;  %v950_v29 = vld [vmem:[#allocation8 + $0x3a0] sm:$0xff]  ;;  %v917_v30 = vld [vmem:[#allocation8 + $0x298] sm:$0xff] }
  0x61   : > { %782 = vmatpush.msra.mxu3 %v535_v60  ;;  %718 = vmatmul.f32.vlgmr.msra.gmra.mxu2 %v470_v61  ;;  %v949_v31 = vld [vmem:[#allocation8 + $0x398] sm:$0xff]  ;;  %v916_v32 = vld [vmem:[#allocation8 + $0x290] sm:$0xff]  ;;  %v915_v36 = vld [vmem:[#allocation8 + $0x288] sm:$0xff] }
  0x62   : > { %783 = vmatmul.f32.vlgmr.msra.gmra.mxu3 %v471_v62  ;;  %1099 = vmatpush.msrb.mxu2 %v929_v63  ;;  %v476_v33 = vld [vmem:[%s2645_s11 + $0x30] sm:$0xff]  ;;  %v477_v34 = vld [vmem:[%s2645_s11 + $0x38] sm:$0xff]  ;;  %v947_v37 = vld [vmem:[#allocation8 + $0x388] sm:$0xff] }
  0x63   : > { %1164 = vmatpush.msrb.mxu3 %v961_v0  ;;  %587 = vmatpush.msra.mxu0 %v502_v1  ;;  %v948_v35 = vld [vmem:[#allocation8 + $0x390] sm:$0xff]  ;;  %v914_v38 = vld [vmem:[#allocation8 + $0x280] sm:$0xff]  ;;  %v479_v40 = vld [vmem:[%s2645_s11 + $0x48] sm:$0xff] }
  0x64   : > { %651 = vmatpush.msra.mxu1 %v536_v2  ;;  %588 = vmatmul.f32.vlgmr.msra.gmra.mxu0 %v470_v61  ;;  %v478_v39 = vld [vmem:[%s2645_s11 + $0x40] sm:$0xff]  ;;  %v913_v42 = vld [vmem:[#allocation8 + $0x278] sm:$0xff]  ;;  %v912_v44 = vld [vmem:[#allocation8 + $0x270] sm:$0xff] }
  0x65   : > { %1100 = vmatpush.msrb.mxu2 %v927_v3  ;;  %969 = vmatpush.msrb.mxu0 %v928_v4  ;;  %v946_v41 = vld [vmem:[#allocation8 + $0x380] sm:$0xff]  ;;  %v945_v43 = vld [vmem:[#allocation8 + $0x378] sm:$0xff]  ;;  %v480_v45 = vld [vmem:[%s2645_s11 + $0x50] sm:$0xff] }
  0x66   : > { %652 = vmatpush.msra.mxu1 %v534_v5  ;;  %1165 = vmatpush.msrb.mxu3 %v959_v6  ;;  %v481_v46 = vld [vmem:[%s2645_s11 + $0x58] sm:$0xff]  ;;  %v944_v47 = vld [vmem:[#allocation8 + $0x370] sm:$0xff]  ;;  %v911_v48 = vld [vmem:[#allocation8 + $0x268] sm:$0xff] }
  0x67   : > { %653 = vmatmul.f32.vlgmr.msra.gmra.mxu1 %v471_v62  ;;  %970 = vmatpush.msrb.mxu0 %v926_v8  ;;  %v943_v49 = vld [vmem:[#allocation8 + $0x368] sm:$0xff]  ;;  %v910_v50 = vld [vmem:[#allocation8 + $0x260] sm:$0xff]  ;;  %v909_v54 = vld [vmem:[#allocation8 + $0x258] sm:$0xff] }
  0x68   : > { %1034 = vmatpush.msrb.mxu1 %v960_v7  ;;  %1101 = vmatpush.msrb.mxu2 %v925_v9  ;;  %v482_v51 = vld [vmem:[%s2645_s11 + $0x60] sm:$0xff]  ;;  %v483_v52 = vld [vmem:[%s2645_s11 + $0x68] sm:$0xff]  ;;  %v941_v55 = vld [vmem:[#allocation8 + $0x358] sm:$0xff] }
  0x69   : > { %1166 = vmatpush.msrb.mxu3 %v957_v10  ;;  %721 = vmatmul.f32.gmra.mxu2 %v472_v11  ;;  %v942_v53 = vld [vmem:[#allocation8 + $0x360] sm:$0xff]  ;;  %v908_v56 = vld [vmem:[#allocation8 + $0x250] sm:$0xff]  ;;  %v485_v58 = vld [vmem:[%s2645_s11 + $0x78] sm:$0xff] }
  0x6a   : > { %786 = vmatmul.f32.gmra.mxu3 %v473_v12  ;;  %1035 = vmatpush.msrb.mxu1 %v958_v13  ;;  %v484_v57 = vld [vmem:[%s2645_s11 + $0x70] sm:$0xff]  ;;  %v907_v60 = vld [vmem:[#allocation8 + $0x248] sm:$0xff]  ;;  %v906_v62 = vld [vmem:[#allocation8 + $0x240] sm:$0xff] }
  0x6b   : > { %971 = vmatpush.msrb.mxu0 %v924_v14  ;;  %1102 = vmatpush.msrb.mxu2 %v923_v15  ;;  %v940_v59 = vld [vmem:[#allocation8 + $0x350] sm:$0xff]  ;;  %v939_v61 = vld [vmem:[#allocation8 + $0x348] sm:$0xff]  ;;  %v486_v63 = vld [vmem:[%s2645_s11 + $0x80] sm:$0xff] }
  0x6c   : > { %1167 = vmatpush.msrb.mxu3 %v955_v16  ;;  %591 = vmatmul.f32.gmra.mxu0 %v472_v11  ;;  %v487_v0 = vld [vmem:[%s2645_s11 + $0x88] sm:$0xff]  ;;  %v938_v1 = vld [vmem:[#allocation8 + $0x340] sm:$0xff]  ;;  %v905_v2 = vld [vmem:[#allocation8 + $0x238] sm:$0xff] }
  0x6d   : > { %1036 = vmatpush.msrb.mxu1 %v956_v17  ;;  %972 = vmatpush.msrb.mxu0 %v922_v18  ;;  %v937_v3 = vld [vmem:[#allocation8 + $0x338] sm:$0xff]  ;;  %v904_v4 = vld [vmem:[#allocation8 + $0x230] sm:$0xff]  ;;  %v903_v8 = vld [vmem:[#allocation8 + $0x228] sm:$0xff] }
  0x6e   : > { %1103 = vmatpush.msrb.mxu2 %v921_v19  ;;  %1168 = vmatpush.msrb.mxu3 %v953_v20  ;;  %v488_v5 = vld [vmem:[%s2645_s11 + $0x90] sm:$0xff]  ;;  %v489_v6 = vld [vmem:[%s2645_s11 + $0x98] sm:$0xff]  ;;  %v935_v9 = vld [vmem:[#allocation8 + $0x328] sm:$0xff] }
  0x6f   : > { %656 = vmatmul.f32.gmra.mxu1 %v473_v12  ;;  %973 = vmatpush.msrb.mxu0 %v920_v22  ;;  %v936_v7 = vld [vmem:[#allocation8 + $0x330] sm:$0xff]  ;;  %v902_v10 = vld [vmem:[#allocation8 + $0x220] sm:$0xff]  ;;  %v491_v12 = vld [vmem:[%s2645_s11 + $0xa8] sm:$0xff] }
  0x70   : > { %1037 = vmatpush.msrb.mxu1 %v954_v21  ;;  %1104 = vmatpush.msrb.mxu2 %v919_v23  ;;  %v490_v11 = vld [vmem:[%s2645_s11 + $0xa0] sm:$0xff]  ;;  %v901_v14 = vld [vmem:[#allocation8 + $0x218] sm:$0xff]  ;;  %v900_v16 = vld [vmem:[#allocation8 + $0x210] sm:$0xff] }
  0x71   : > { %1169 = vmatpush.msrb.mxu3 %v951_v24  ;;  %724 = vmatmul.f32.gmra.mxu2 %v474_v25  ;;  %v934_v13 = vld [vmem:[#allocation8 + $0x320] sm:$0xff]  ;;  %v933_v15 = vld [vmem:[#allocation8 + $0x318] sm:$0xff]  ;;  %v492_v17 = vld [vmem:[%s2645_s11 + $0xb0] sm:$0xff] }
  0x72   : > { %789 = vmatmul.f32.gmra.mxu3 %v475_v26  ;;  %1038 = vmatpush.msrb.mxu1 %v952_v27  ;;  %v493_v18 = vld [vmem:[%s2645_s11 + $0xb8] sm:$0xff]  ;;  %v932_v19 = vld [vmem:[#allocation8 + $0x310] sm:$0xff]  ;;  %v899_v20 = vld [vmem:[#allocation8 + $0x208] sm:$0xff] }
  0x73   : > { %974 = vmatpush.msrb.mxu0 %v918_v28  ;;  %1105 = vmatpush.msrb.mxu2 %v917_v30  ;;  %v931_v21 = vld [vmem:[#allocation8 + $0x308] sm:$0xff]  ;;  %v898_v22 = vld [vmem:[#allocation8 + $0x200] sm:$0xff]  ;;  %v1358_v27 = vld [vmem:[#allocation8 + $0x5f8] sm:$0xff] }
  0x74   : > { %1170 = vmatpush.msrb.mxu3 %v949_v31  ;;  %594 = vmatmul.f32.gmra.mxu0 %v474_v25  ;;  %v494_v23 = vld [vmem:[%s2645_s11 + $0xc0] sm:$0xff]  ;;  %v495_v24 = vld [vmem:[%s2645_s11 + $0xc8] sm:$0xff]  ;;  %v496_v28 = vld [vmem:[%s2645_s11 + $0xd0] sm:$0xff] }
  0x75   : > { %1039 = vmatpush.msrb.mxu1 %v950_v29  ;;  %975 = vmatpush.msrb.mxu0 %v916_v32  ;;  %v930_v25 = vld [vmem:[#allocation8 + $0x300] sm:$0xff]  ;;  %v497_v29 = vld [vmem:[%s2645_s11 + $0xd8] sm:$0xff]  ;;  %v1325_v30 = vld [vmem:[#allocation8 + $0x4f0] sm:$0xff] }
  0x76   : > { %1106 = vmatpush.msrb.mxu2 %v915_v36  ;;  %1171 = vmatpush.msrb.mxu3 %v947_v37  ;;  %v1357_v31 = vld [vmem:[#allocation8 + $0x5f0] sm:$0xff]  ;;  %v1324_v32 = vld [vmem:[#allocation8 + $0x4e8] sm:$0xff]  ;;  %v1323_v36 = vld [vmem:[#allocation8 + $0x4e0] sm:$0xff] }
  0x77   : > { %659 = vmatmul.f32.gmra.mxu1 %v475_v26  ;;  %976 = vmatpush.msrb.mxu0 %v914_v38  ;;  %v1326_v26 = vld [vmem:[#allocation8 + $0x4f8] sm:$0xff]  ;;  %v1355_v37 = vld [vmem:[#allocation8 + $0x5e0] sm:$0xff] }
  0x78   : > { %1040 = vmatpush.msrb.mxu1 %v948_v35  ;;  %1107 = vmatpush.msrb.mxu2 %v913_v42  ;;  %v499_v35 = vld [vmem:[%s2645_s11 + $0xe8] sm:$0xff]  ;;  %v1322_v38 = vld [vmem:[#allocation8 + $0x4d8] sm:$0xff]  ;;  %v1321_v42 = vld [vmem:[#allocation8 + $0x4d0] sm:$0xff] }
  0x79   : > { %727 = vmatmul.f32.gmra.mxu2 %v476_v33  ;;  %1172 = vmatpush.msrb.mxu3 %v945_v43  ;;  %v1353_v43 = vld [vmem:[#allocation8 + $0x5d0] sm:$0xff] }
  0x7a   : > { %792 = vmatmul.f32.gmra.mxu3 %v477_v34  ;;  %1041 = vmatpush.msrb.mxu1 %v946_v41  ;;  %v501_v41 = vld [vmem:[%s2645_s11 + $0xf8] sm:$0xff] }
  0x7b   : > { %977 = vmatpush.msrb.mxu0 %v912_v44  ;;  %1108 = vmatpush.msrb.mxu2 %v911_v48  ;;  %v1320_v44 = vld [vmem:[#allocation8 + $0x4c8] sm:$0xff] }
  0x7c   : > { %597 = vmatmul.f32.gmra.mxu0 %v476_v33  ;;  %1042 = vmatpush.msrb.mxu1 %v944_v47  ;;  %v1356_v33 = vld [vmem:[#allocation8 + $0x5e8] sm:$0xff]  ;;  %v865_v47 = vld [vmem:[%s2655_s12] sm:$0xff] }
  0x7d   : > { %1173 = vmatpush.msrb.mxu3 %v943_v49  ;;  %978 = vmatpush.msrb.mxu0 %v910_v50  ;;  %v866_v48 = vld [vmem:[%s2655_s12 + $0x8] sm:$0xff] }
  0x7e   : > { %1043 = vmatpush.msrb.mxu1 %v942_v53  ;;  %1109 = vmatpush.msrb.mxu2 %v909_v54  ;;  %v1351_v53 = vld [vmem:[#allocation8 + $0x5c0] sm:$0xff]  ;;  %v1318_v54 = vld [vmem:[#allocation8 + $0x4b8] sm:$0xff] }
  0x7f   : > { %662 = vmatmul.f32.gmra.mxu1 %v477_v34  ;;  %1174 = vmatpush.msrb.mxu3 %v941_v55  ;;  %v498_v34 = vld [vmem:[%s2645_s11 + $0xe0] sm:$0xff] }
  0x80   : > { %979 = vmatpush.msrb.mxu0 %v908_v56  ;;  %1044 = vmatpush.msrb.mxu1 %v940_v59  ;;  %v1350_v56 = vld [vmem:[#allocation8 + $0x5b8] sm:$0xff] }
  0x81   : > { %730 = vmatmul.f32.gmra.mxu2 %v478_v39  ;;  %1175 = vmatpush.msrb.mxu3 %v939_v61 }
  0x82   : > { %795 = vmatmul.f32.gmra.mxu3 %v479_v40  ;;  %1110 = vmatpush.msrb.mxu2 %v907_v60 }
  0x83   : > { %980 = vmatpush.msrb.mxu0 %v906_v62  ;;  %1045 = vmatpush.msrb.mxu1 %v938_v1  ;;  %v867_v62 = vld [vmem:[%s2655_s12 + $0x10] sm:$0xff] }
  0x84   : > { %600 = vmatmul.f32.gmra.mxu0 %v478_v39  ;;  %1111 = vmatpush.msrb.mxu2 %v905_v2  ;;  %v1354_v39 = vld [vmem:[#allocation8 + $0x5d8] sm:$0xff]  ;;  %v1317_v2 = vld [vmem:[#allocation8 + $0x4b0] sm:$0xff] }
  0x85   : > { %1176 = vmatpush.msrb.mxu3 %v937_v3  ;;  %981 = vmatpush.msrb.mxu0 %v904_v4  ;;  %v1349_v3 = vld [vmem:[#allocation8 + $0x5b0] sm:$0xff]  ;;  %v1316_v4 = vld [vmem:[#allocation8 + $0x4a8] sm:$0xff] }
  0x86   : > { %1046 = vmatpush.msrb.mxu1 %v936_v7  ;;  %1112 = vmatpush.msrb.mxu2 %v903_v8 }
  0x87   : > { %665 = vmatmul.f32.gmra.mxu1 %v479_v40  ;;  %1177 = vmatpush.msrb.mxu3 %v935_v9  ;;  %v500_v40 = vld [vmem:[%s2645_s11 + $0xf0] sm:$0xff] }
  0x88   : > { %982 = vmatpush.msrb.mxu0 %v902_v10  ;;  %1047 = vmatpush.msrb.mxu1 %v934_v13  ;;  %v870_v13 = vld [vmem:[%s2655_s12 + $0x28] sm:$0xff] }
  0x89   : > { %733 = vmatmul.f32.gmra.mxu2 %v480_v45  ;;  %1178 = vmatpush.msrb.mxu3 %v933_v15 }
  0x8a   : > { %798 = vmatmul.f32.gmra.mxu3 %v481_v46  ;;  %1113 = vmatpush.msrb.mxu2 %v901_v14 }
  0x8b   : > { %983 = vmatpush.msrb.mxu0 %v900_v16  ;;  %1048 = vmatpush.msrb.mxu1 %v932_v19  ;;  %v1315_v16 = vld [vmem:[#allocation8 + $0x4a0] sm:$0xff] }
  0x8c   : > { %603 = vmatmul.f32.gmra.mxu0 %v480_v45  ;;  %1114 = vmatpush.msrb.mxu2 %v899_v20  ;;  %v1352_v45 = vld [vmem:[#allocation8 + $0x5c8] sm:$0xff]  ;;  %v1346_v20 = vld [vmem:[#allocation8 + $0x598] sm:$0xff] }
  0x8d   : > { %1179 = vmatpush.msrb.mxu3 %v931_v21  ;;  %984 = vmatpush.msrb.mxu0 %v898_v22 }
  0x8e   : > { %1049 = vmatpush.msrb.mxu1 %v930_v25  ;;  %1496 = vmatpush.msra.mxu2 %v1326_v26  ;;  %v871_v26 = vld [vmem:[%s2655_s12 + $0x30] sm:$0xff] }
  0x8f   : > { %668 = vmatmul.f32.gmra.mxu1 %v481_v46  ;;  %1561 = vmatpush.msra.mxu3 %v1358_v27  ;;  %v566_v46 = vld [vmem:[#allocation10] sm:$0x3]  ;;  %v872_v27 = vld [vmem:[%s2655_s12 + $0x38] sm:$0xff] }
  0x90   : > { %1366 = vmatpush.msra.mxu0 %v1325_v30  ;;  %1431 = vmatpush.msra.mxu1 %v1357_v31  ;;  %v2702_v49 = vperm.slane %v566_v46, 0  ;;  %v1313_v30 = vld [vmem:[#allocation8 + $0x490] sm:$0xff] }
  0x91   : > { %736 = vmatmul.f32.gmra.mxu2 %v482_v51  ;;  %1562 = vmatpush.msra.mxu3 %v1356_v33  ;;  %v1345_v31 = vld [vmem:[#allocation8 + $0x590] sm:$0xff] }
  0x92   : > { %801 = vmatmul.f32.gmra.mxu3 %v483_v52  ;;  %1497 = vmatpush.msra.mxu2 %v1324_v32  ;;  %v1312_v32 = vld [vmem:[#allocation8 + $0x488] sm:$0xff] }
  0x93   : > { %1367 = vmatpush.msra.mxu0 %v1323_v36  ;;  %1432 = vmatpush.msra.mxu1 %v1355_v37 }
  0x94   : > { %606 = vmatmul.f32.gmra.mxu0 %v482_v51  ;;  %1498 = vmatpush.msra.mxu2 %v1322_v38  ;;  %v2704_v51 = vperm.slane %v566_v46, 1  ;;  %v1310_v46 = vld [vmem:[#allocation8 + $0x478] sm:$0xff] }
  0x95   : > { %1563 = vmatpush.msra.mxu3 %v1354_v39  ;;  %1368 = vmatpush.msra.mxu0 %v1321_v42 }
  0x96   : > { %1433 = vmatpush.msra.mxu1 %v1353_v43  ;;  %1499 = vmatpush.msra.mxu2 %v1320_v44  ;;  %v1311_v44 = vld [vmem:[#allocation8 + $0x480] sm:$0xff] }
  0x97   : > { %671 = vmatmul.f32.gmra.mxu1 %v483_v52  ;;  %1564 = vmatpush.msra.mxu3 %v1352_v45  ;;  %v1319_v52 = vld [vmem:[#allocation8 + $0x4c0] sm:$0xff] }
  0x98   : > { %1369 = vmatpush.msra.mxu0 %v1319_v52  ;;  %1434 = vmatpush.msra.mxu1 %v1351_v53  ;;  %v1343_v45 = vld [vmem:[#allocation8 + $0x580] sm:$0xff] }
  0x99   : > { %739 = vmatmul.f32.gmra.mxu2 %v484_v57  ;;  %1565 = vmatpush.msra.mxu3 %v1350_v56  ;;  %v875_v56 = vld [vmem:[%s2655_s12 + $0x50] sm:$0xff] }
  0x9a   : > { %804 = vmatmul.f32.gmra.mxu3 %v485_v58  ;;  %1500 = vmatpush.msra.mxu2 %v1318_v54 }
  0x9b   : > { %1370 = vmatpush.msra.mxu0 %v1317_v2  ;;  %1435 = vmatpush.msra.mxu1 %v1349_v3 }
  0x9c   : > { %609 = vmatmul.f32.gmra.mxu0 %v484_v57  ;;  %1501 = vmatpush.msra.mxu2 %v1316_v4 }
  0x9d   : > { %1371 = vmatpush.msra.mxu0 %v1315_v16 }
  0x9f   : > { %674 = vmatmul.f32.gmra.mxu1 %v485_v58  ;;  %1372 = vmatpush.msra.mxu0 %v1313_v30 }
  0xa1   : > { %742 = vmatmul.f32.gmra.mxu2 %v486_v63  ;;  %1373 = vmatpush.msra.mxu0 %v1311_v44 }
  0xa2   : > { %807 = vmatmul.f32.gmra.mxu3 %v487_v0 }
  0xa4   : > { %612 = vmatmul.f32.gmra.mxu0 %v486_v63  ;;  %v868_v63 = vld [vmem:[%s2655_s12 + $0x18] sm:$0xff] }
  0xa7   : > { %677 = vmatmul.f32.gmra.mxu1 %v487_v0 }
  0xa9   : > { %745 = vmatmul.f32.gmra.mxu2 %v488_v5 }
  0xaa   : > { %810 = vmatmul.f32.gmra.mxu3 %v489_v6 }
  0xac   : > { %615 = vmatmul.f32.gmra.mxu0 %v488_v5 }
  0xaf   : > { %680 = vmatmul.f32.gmra.mxu1 %v489_v6  ;;  %v1348_v6 = vld [vmem:[#allocation8 + $0x5a8] sm:$0xff] }
  0xb0   : > { %1566 = vmatpush.msra.mxu3 %v1348_v6  ;;  %v877_v6 = vld [vmem:[%s2655_s12 + $0x60] sm:$0xff] }
  0xb1   : > { %748 = vmatmul.f32.gmra.mxu2 %v490_v11 }
  0xb2   : > { %813 = vmatmul.f32.gmra.mxu3 %v491_v12 }
  0xb3   : > { %1567 = vmatpush.msra.mxu3 %v1346_v20  ;;  %v879_v20 = vld [vmem:[%s2655_s12 + $0x70] sm:$0xff] }
  0xb4   : > { %618 = vmatmul.f32.gmra.mxu0 %v490_v11 }
  0xb7   : > { %683 = vmatmul.f32.gmra.mxu1 %v491_v12  ;;  %v869_v12 = vld [vmem:[%s2655_s12 + $0x20] sm:$0xff] }
  0xb9   : > { %751 = vmatmul.f32.gmra.mxu2 %v492_v17 }
  0xba   : > { %816 = vmatmul.f32.gmra.mxu3 %v493_v18 }
  0xbc   : > { %621 = vmatmul.f32.gmra.mxu0 %v492_v17  ;;  %v1347_v17 = vld [vmem:[#allocation8 + $0x5a0] sm:$0xff] }
  0xbd   : > { %1436 = vmatpush.msra.mxu1 %v1347_v17 }
  0xbf   : > { %686 = vmatmul.f32.gmra.mxu1 %v493_v18  ;;  %v1314_v18 = vld [vmem:[#allocation8 + $0x498] sm:$0xff] }
  0xc0   : > { %1502 = vmatpush.msra.mxu2 %v1314_v18  ;;  %1437 = vmatpush.msra.mxu1 %v1345_v31 }
  0xc1   : > { %754 = vmatmul.f32.gmra.mxu2 %v494_v23 }
  0xc2   : > { %819 = vmatmul.f32.gmra.mxu3 %v495_v24  ;;  %1503 = vmatpush.msra.mxu2 %v1312_v32 }
  0xc3   : > { %1438 = vmatpush.msra.mxu1 %v1343_v45 }
  0xc4   : > { %624 = vmatmul.f32.gmra.mxu0 %v494_v23  ;;  %1504 = vmatpush.msra.mxu2 %v1310_v46 }
  0xc7   : > { %689 = vmatmul.f32.gmra.mxu1 %v495_v24 }
  0xc9   : > { %757 = vmatmul.f32.gmra.mxu2 %v496_v28 }
  0xca   : > { %822 = vmatmul.f32.gmra.mxu3 %v497_v29 }
  0xcc   : > { %627 = vmatmul.f32.gmra.mxu0 %v496_v28 }
  0xcf   : > { %692 = vmatmul.f32.gmra.mxu1 %v497_v29 }
  0xd1   : > { %760 = vmatmul.f32.gmra.mxu2 %v498_v34 }
  0xd2   : > { %825 = vmatmul.f32.gmra.mxu3 %v499_v35 }
  0xd4   : > { %630 = vmatmul.f32.gmra.mxu0 %v498_v34  ;;  %v1344_v34 = vld [vmem:[#allocation8 + $0x588] sm:$0xff] }
  0xd5   : > { %1568 = vmatpush.msra.mxu3 %v1344_v34  ;;  %v881_v34 = vld [vmem:[%s2655_s12 + $0x80] sm:$0xff] }
  0xd7   : > { %695 = vmatmul.f32.gmra.mxu1 %v499_v35 }
  0xd9   : > { %763 = vmatmul.f32.gmra.mxu2 %v500_v40 }
  0xda   : > { %828 = vmatmul.f32.gmra.mxu3 %v501_v41 }
  0xdc   : > { %633 = vmatmul.f32.gmra.mxu0 %v500_v40  ;;  %v873_v40 = vld [vmem:[%s2655_s12 + $0x40] sm:$0xff] }
  0xdf   : > { %698 = vmatmul.f32.gmra.mxu1 %v501_v41  ;;  %v874_v41 = vld [vmem:[%s2655_s12 + $0x48] sm:$0xff] }
  0xe1   : > { %1115 = vmatmul.f32.vlgmr.msrb.gmra.mxu2 %v865_v47  ;;  %v589_v50 = vpop.f32.mrf.mxu0 }
  0xe2   : > { %1180 = vmatmul.f32.vlgmr.msrb.gmra.mxu3 %v866_v48  ;;  %v590_v55 = vadd.f32 %v589_v50, %v2702_v49 }
  0xe4   : > { %v654_v57 = vpop.f32.mrf.mxu1  ;;  %v719_v58 = vpop.f32.mrf.mxu2  ;;  %985 = vmatmul.f32.vlgmr.msrb.gmra.mxu0 %v865_v47 }
  0xe5   : > { %v655_v59 = vadd.f32 %v654_v57, %v590_v55  ;;  %v784_v60 = vpop.f32.mrf.mxu3  ;;  %v720_v61 = vadd.f32 %v719_v58, %v2704_v51  ;;  %v876_v57 = vld [vmem:[%s2655_s12 + $0x58] sm:$0xff] }
  0xe7   : > { %832 = vst [vmem:[%s2709_s9] sm:$0xff] %v655_v59  ;;  %1050 = vmatmul.f32.vlgmr.msrb.gmra.mxu1 %v866_v48  ;;  %v785_v0 = vadd.f32 %v784_v60, %v720_v61  ;;  %v1342_v48 = vld [vmem:[#allocation8 + $0x578] sm:$0xff]  ;;  %v1309_v60 = vld [vmem:[#allocation8 + $0x470] sm:$0xff] }
  0xe8   : > { %1569 = vmatpush.msra.mxu3 %v1342_v48  ;;  %v1341_v61 = vld [vmem:[#allocation8 + $0x570] sm:$0xff]  ;;  %1374 = vmatpush.msra.mxu0 %v1309_v60 }
  0xe9   : > { %1973 = vst [vmem:[%s2709_s9 + $0x80] sm:$0xff] %v785_v0  ;;  %1118 = vmatmul.f32.gmra.mxu2 %v867_v62  ;;  %v592_v1 = vpop.f32.mrf.mxu0  ;;  %1439 = vmatpush.msra.mxu1 %v1341_v61  ;;  %v1340_v0 = vld [vmem:[#allocation8 + $0x568] sm:$0xff]  ;;  %v883_v48 = vld [vmem:[%s2655_s12 + $0x90] sm:$0xff] }
  0xea   : > { %1183 = vmatmul.f32.gmra.mxu3 %v868_v63  ;;  %v593_v5 = vadd.f32 %v592_v1, %v2702_v49 }
  0xeb   : > { %1570 = vmatpush.msra.mxu3 %v1340_v0  ;;  %v885_v0 = vld [vmem:[%s2655_s12 + $0xa0] sm:$0xff] }
  0xec   : > { %v657_v7 = vpop.f32.mrf.mxu1  ;;  %v722_v8 = vpop.f32.mrf.mxu2  ;;  %988 = vmatmul.f32.gmra.mxu0 %v867_v62  ;;  %v1308_v62 = vld [vmem:[#allocation8 + $0x468] sm:$0xff] }
  0xed   : > { %v658_v9 = vadd.f32 %v657_v7, %v593_v5  ;;  %v787_v10 = vpop.f32.mrf.mxu3  ;;  %v723_v11 = vadd.f32 %v722_v8, %v2704_v51  ;;  %1505 = vmatpush.msra.mxu2 %v1308_v62  ;;  %v878_v7 = vld [vmem:[%s2655_s12 + $0x68] sm:$0xff] }
  0xef   : > { %833 = vst [vmem:[%s2709_s9 + $0x8] sm:$0xff] %v658_v9  ;;  %1053 = vmatmul.f32.gmra.mxu1 %v868_v63  ;;  %v788_v14 = vadd.f32 %v787_v10, %v723_v11  ;;  %v1307_v10 = vld [vmem:[#allocation8 + $0x460] sm:$0xff] }
  0xf0   : > { %v1339_v11 = vld [vmem:[#allocation8 + $0x560] sm:$0xff]  ;;  %1375 = vmatpush.msra.mxu0 %v1307_v10 }
  0xf1   : > { %1974 = vst [vmem:[%s2709_s9 + $0x88] sm:$0xff] %v788_v14  ;;  %1121 = vmatmul.f32.gmra.mxu2 %v869_v12  ;;  %v595_v15 = vpop.f32.mrf.mxu0  ;;  %1440 = vmatpush.msra.mxu1 %v1339_v11  ;;  %v1338_v14 = vld [vmem:[#allocation8 + $0x558] sm:$0xff] }
  0xf2   : > { %1186 = vmatmul.f32.gmra.mxu3 %v870_v13  ;;  %v596_v19 = vadd.f32 %v595_v15, %v2702_v49 }
  0xf3   : > { %1571 = vmatpush.msra.mxu3 %v1338_v14  ;;  %v887_v14 = vld [vmem:[%s2655_s12 + $0xb0] sm:$0xff] }
  0xf4   : > { %v660_v21 = vpop.f32.mrf.mxu1  ;;  %v725_v22 = vpop.f32.mrf.mxu2  ;;  %991 = vmatmul.f32.gmra.mxu0 %v869_v12  ;;  %v1306_v12 = vld [vmem:[#allocation8 + $0x458] sm:$0xff] }
  0xf5   : > { %v661_v23 = vadd.f32 %v660_v21, %v596_v19  ;;  %v790_v24 = vpop.f32.mrf.mxu3  ;;  %v726_v25 = vadd.f32 %v725_v22, %v2704_v51  ;;  %1506 = vmatpush.msra.mxu2 %v1306_v12  ;;  %v880_v21 = vld [vmem:[%s2655_s12 + $0x78] sm:$0xff] }
  0xf7   : > { %834 = vst [vmem:[%s2709_s9 + $0x10] sm:$0xff] %v661_v23  ;;  %1056 = vmatmul.f32.gmra.mxu1 %v870_v13  ;;  %v791_v28 = vadd.f32 %v790_v24, %v726_v25  ;;  %v1305_v24 = vld [vmem:[#allocation8 + $0x450] sm:$0xff] }
  0xf8   : > { %v1337_v25 = vld [vmem:[#allocation8 + $0x550] sm:$0xff]  ;;  %1376 = vmatpush.msra.mxu0 %v1305_v24 }
  0xf9   : > { %1975 = vst [vmem:[%s2709_s9 + $0x90] sm:$0xff] %v791_v28  ;;  %1124 = vmatmul.f32.gmra.mxu2 %v871_v26  ;;  %v598_v29 = vpop.f32.mrf.mxu0  ;;  %1441 = vmatpush.msra.mxu1 %v1337_v25  ;;  %v1336_v28 = vld [vmem:[#allocation8 + $0x548] sm:$0xff] }
  0xfa   : > { %1189 = vmatmul.f32.gmra.mxu3 %v872_v27  ;;  %v599_v33 = vadd.f32 %v598_v29, %v2702_v49 }
  0xfb   : > { %1572 = vmatpush.msra.mxu3 %v1336_v28  ;;  %v889_v28 = vld [vmem:[%s2655_s12 + $0xc0] sm:$0xff] }
  0xfc   : > { %v663_v35 = vpop.f32.mrf.mxu1  ;;  %v728_v36 = vpop.f32.mrf.mxu2  ;;  %994 = vmatmul.f32.gmra.mxu0 %v871_v26  ;;  %v1304_v26 = vld [vmem:[#allocation8 + $0x448] sm:$0xff] }
  0xfd   : > { %v664_v37 = vadd.f32 %v663_v35, %v599_v33  ;;  %v793_v38 = vpop.f32.mrf.mxu3  ;;  %v729_v39 = vadd.f32 %v728_v36, %v2704_v51  ;;  %1507 = vmatpush.msra.mxu2 %v1304_v26  ;;  %v882_v35 = vld [vmem:[%s2655_s12 + $0x88] sm:$0xff] }
  0xff   : > { %835 = vst [vmem:[%s2709_s9 + $0x18] sm:$0xff] %v664_v37  ;;  %1059 = vmatmul.f32.gmra.mxu1 %v872_v27  ;;  %v794_v42 = vadd.f32 %v793_v38, %v729_v39  ;;  %v1303_v38 = vld [vmem:[#allocation8 + $0x440] sm:$0xff] }
 0x100   : > { %v1335_v39 = vld [vmem:[#allocation8 + $0x540] sm:$0xff]  ;;  %1377 = vmatpush.msra.mxu0 %v1303_v38 }
 0x101   : > { %1976 = vst [vmem:[%s2709_s9 + $0x98] sm:$0xff] %v794_v42  ;;  %1127 = vmatmul.f32.gmra.mxu2 %v873_v40  ;;  %v601_v43 = vpop.f32.mrf.mxu0  ;;  %1442 = vmatpush.msra.mxu1 %v1335_v39  ;;  %v1334_v42 = vld [vmem:[#allocation8 + $0x538] sm:$0xff] }
 0x102   : > { %1192 = vmatmul.f32.gmra.mxu3 %v874_v41  ;;  %v602_v47 = vadd.f32 %v601_v43, %v2702_v49 }
 0x103   : > { %1573 = vmatpush.msra.mxu3 %v1334_v42 }
 0x104   : > { %v666_v50 = vpop.f32.mrf.mxu1  ;;  %v731_v52 = vpop.f32.mrf.mxu2  ;;  %997 = vmatmul.f32.gmra.mxu0 %v873_v40  ;;  %v1302_v40 = vld [vmem:[#allocation8 + $0x438] sm:$0xff] }
 0x105   : > { %v667_v53 = vadd.f32 %v666_v50, %v602_v47  ;;  %v796_v54 = vpop.f32.mrf.mxu3  ;;  %v732_v55 = vadd.f32 %v731_v52, %v2704_v51  ;;  %1508 = vmatpush.msra.mxu2 %v1302_v40  ;;  %v884_v50 = vld [vmem:[%s2655_s12 + $0x98] sm:$0xff]  ;;  %v891_v40 = vld [vmem:[%s2655_s12 + $0xd0] sm:$0xff] }
 0x107   : > { %836 = vst [vmem:[%s2709_s9 + $0x20] sm:$0xff] %v667_v53  ;;  %1062 = vmatmul.f32.gmra.mxu1 %v874_v41  ;;  %v797_v58 = vadd.f32 %v796_v54, %v732_v55  ;;  %v1301_v54 = vld [vmem:[#allocation8 + $0x430] sm:$0xff] }
 0x108   : > { %v1333_v55 = vld [vmem:[#allocation8 + $0x530] sm:$0xff]  ;;  %1378 = vmatpush.msra.mxu0 %v1301_v54 }
 0x109   : > { %1977 = vst [vmem:[%s2709_s9 + $0xa0] sm:$0xff] %v797_v58  ;;  %1130 = vmatmul.f32.gmra.mxu2 %v875_v56  ;;  %v604_v59 = vpop.f32.mrf.mxu0  ;;  %1443 = vmatpush.msra.mxu1 %v1333_v55  ;;  %v1332_v58 = vld [vmem:[#allocation8 + $0x528] sm:$0xff] }
 0x10a   : > { %1195 = vmatmul.f32.gmra.mxu3 %v876_v57  ;;  %v605_v63 = vadd.f32 %v604_v59, %v2702_v49 }
 0x10b   : > { %1574 = vmatpush.msra.mxu3 %v1332_v58 }
 0x10c   : > { %v669_v1 = vpop.f32.mrf.mxu1  ;;  %v734_v2 = vpop.f32.mrf.mxu2  ;;  %1000 = vmatmul.f32.gmra.mxu0 %v875_v56  ;;  %v1300_v56 = vld [vmem:[#allocation8 + $0x428] sm:$0xff] }
 0x10d   : > { %v670_v3 = vadd.f32 %v669_v1, %v605_v63  ;;  %v799_v4 = vpop.f32.mrf.mxu3  ;;  %v735_v5 = vadd.f32 %v734_v2, %v2704_v51  ;;  %1509 = vmatpush.msra.mxu2 %v1300_v56  ;;  %v886_v1 = vld [vmem:[%s2655_s12 + $0xa8] sm:$0xff] }
 0x10f   : > { %837 = vst [vmem:[%s2709_s9 + $0x28] sm:$0xff] %v670_v3  ;;  %1065 = vmatmul.f32.gmra.mxu1 %v876_v57  ;;  %v800_v8 = vadd.f32 %v799_v4, %v735_v5  ;;  %v1299_v4 = vld [vmem:[#allocation8 + $0x420] sm:$0xff] }
 0x110   : > { %v1331_v5 = vld [vmem:[#allocation8 + $0x520] sm:$0xff]  ;;  %1379 = vmatpush.msra.mxu0 %v1299_v4 }
 0x111   : > { %1978 = vst [vmem:[%s2709_s9 + $0xa8] sm:$0xff] %v800_v8  ;;  %1133 = vmatmul.f32.gmra.mxu2 %v877_v6  ;;  %v607_v9 = vpop.f32.mrf.mxu0  ;;  %1444 = vmatpush.msra.mxu1 %v1331_v5  ;;  %v1330_v8 = vld [vmem:[#allocation8 + $0x518] sm:$0xff]  ;;  %v963_v4 = vld [vmem:[#allocation10 + $0x2] sm:$0x3] }
 0x112   : > { %1198 = vmatmul.f32.gmra.mxu3 %v878_v7  ;;  %v608_v13 = vadd.f32 %v607_v9, %v2702_v49 }
 0x113   : > { %1575 = vmatpush.msra.mxu3 %v1330_v8 }
 0x114   : > { %v672_v15 = vpop.f32.mrf.mxu1  ;;  %v737_v16 = vpop.f32.mrf.mxu2  ;;  %1003 = vmatmul.f32.gmra.mxu0 %v877_v6  ;;  %v1298_v6 = vld [vmem:[#allocation8 + $0x418] sm:$0xff] }
 0x115   : > { %v673_v17 = vadd.f32 %v672_v15, %v608_v13  ;;  %v802_v18 = vpop.f32.mrf.mxu3  ;;  %v738_v19 = vadd.f32 %v737_v16, %v2704_v51  ;;  %1510 = vmatpush.msra.mxu2 %v1298_v6  ;;  %v888_v15 = vld [vmem:[%s2655_s12 + $0xb8] sm:$0xff] }
 0x117   : > { %838 = vst [vmem:[%s2709_s9 + $0x30] sm:$0xff] %v673_v17  ;;  %1068 = vmatmul.f32.gmra.mxu1 %v878_v7  ;;  %v803_v22 = vadd.f32 %v802_v18, %v738_v19  ;;  %v1297_v18 = vld [vmem:[#allocation8 + $0x410] sm:$0xff] }
 0x118   : > { %v1329_v19 = vld [vmem:[#allocation8 + $0x510] sm:$0xff]  ;;  %1380 = vmatpush.msra.mxu0 %v1297_v18 }
 0x119   : > { %1979 = vst [vmem:[%s2709_s9 + $0xb0] sm:$0xff] %v803_v22  ;;  %1136 = vmatmul.f32.gmra.mxu2 %v879_v20  ;;  %v610_v23 = vpop.f32.mrf.mxu0  ;;  %1445 = vmatpush.msra.mxu1 %v1329_v19  ;;  %v1328_v22 = vld [vmem:[#allocation8 + $0x508] sm:$0xff]  ;;  %v1264_v19 = vld [vmem:[%s2662_s13 + $0x10] sm:$0xff] }
 0x11a   : > { %1201 = vmatmul.f32.gmra.mxu3 %v880_v21  ;;  %v611_v27 = vadd.f32 %v610_v23, %v2702_v49 }
 0x11b   : > { %1576 = vmatpush.msra.mxu3 %v1328_v22 }
 0x11c   : > { %v675_v29 = vpop.f32.mrf.mxu1  ;;  %v740_v30 = vpop.f32.mrf.mxu2  ;;  %1006 = vmatmul.f32.gmra.mxu0 %v879_v20  ;;  %v1296_v20 = vld [vmem:[#allocation8 + $0x408] sm:$0xff] }
 0x11d   : > { %v676_v31 = vadd.f32 %v675_v29, %v611_v27  ;;  %v805_v32 = vpop.f32.mrf.mxu3  ;;  %v741_v33 = vadd.f32 %v740_v30, %v2704_v51  ;;  %1511 = vmatpush.msra.mxu2 %v1296_v20  ;;  %v890_v29 = vld [vmem:[%s2655_s12 + $0xc8] sm:$0xff]  ;;  %v1265_v20 = vld [vmem:[%s2662_s13 + $0x18] sm:$0xff] }
 0x11f   : > { %839 = vst [vmem:[%s2709_s9 + $0x38] sm:$0xff] %v676_v31  ;;  %1071 = vmatmul.f32.gmra.mxu1 %v880_v21  ;;  %v806_v36 = vadd.f32 %v805_v32, %v741_v33  ;;  %v1295_v32 = vld [vmem:[#allocation8 + $0x400] sm:$0xff] }
 0x120   : > { %v1327_v33 = vld [vmem:[#allocation8 + $0x500] sm:$0xff]  ;;  %1381 = vmatpush.msra.mxu0 %v1295_v32 }
 0x121   : > { %1980 = vst [vmem:[%s2709_s9 + $0xb8] sm:$0xff] %v806_v36  ;;  %1139 = vmatmul.f32.gmra.mxu2 %v881_v34  ;;  %v613_v37 = vpop.f32.mrf.mxu0  ;;  %1446 = vmatpush.msra.mxu1 %v1327_v33 }
 0x122   : > { %1204 = vmatmul.f32.gmra.mxu3 %v882_v35  ;;  %v614_v41 = vadd.f32 %v613_v37, %v2702_v49 }
 0x124   : > { %v678_v43 = vpop.f32.mrf.mxu1  ;;  %v743_v44 = vpop.f32.mrf.mxu2  ;;  %1009 = vmatmul.f32.gmra.mxu0 %v881_v34 }
 0x125   : > { %v679_v45 = vadd.f32 %v678_v43, %v614_v41  ;;  %v808_v46 = vpop.f32.mrf.mxu3  ;;  %v744_v47 = vadd.f32 %v743_v44, %v2704_v51  ;;  %v892_v41 = vld [vmem:[%s2655_s12 + $0xd8] sm:$0xff] }
 0x127   : > { %840 = vst [vmem:[%s2709_s9 + $0x40] sm:$0xff] %v679_v45  ;;  %1074 = vmatmul.f32.gmra.mxu1 %v882_v35  ;;  %v809_v52 = vadd.f32 %v808_v46, %v744_v47 }
 0x129   : > { %1981 = vst [vmem:[%s2709_s9 + $0xc0] sm:$0xff] %v809_v52  ;;  %1142 = vmatmul.f32.gmra.mxu2 %v883_v48  ;;  %v616_v53 = vpop.f32.mrf.mxu0  ;;  %v893_v52 = vld [vmem:[%s2655_s12 + $0xe0] sm:$0xff] }
 0x12a   : > { %1207 = vmatmul.f32.gmra.mxu3 %v884_v50  ;;  %v617_v57 = vadd.f32 %v616_v53, %v2702_v49  ;;  %v894_v53 = vld [vmem:[%s2655_s12 + $0xe8] sm:$0xff] }
 0x12c   : > { %v681_v59 = vpop.f32.mrf.mxu1  ;;  %v746_v60 = vpop.f32.mrf.mxu2  ;;  %1012 = vmatmul.f32.gmra.mxu0 %v883_v48 }
 0x12d   : > { %v682_v61 = vadd.f32 %v681_v59, %v617_v57  ;;  %v811_v62 = vpop.f32.mrf.mxu3  ;;  %v747_v63 = vadd.f32 %v746_v60, %v2704_v51 }
 0x12f   : > { %841 = vst [vmem:[%s2709_s9 + $0x48] sm:$0xff] %v682_v61  ;;  %1077 = vmatmul.f32.gmra.mxu1 %v884_v50  ;;  %v812_v2 = vadd.f32 %v811_v62, %v747_v63  ;;  %v895_v62 = vld [vmem:[%s2655_s12 + $0xf0] sm:$0xff]  ;;  %v896_v63 = vld [vmem:[%s2655_s12 + $0xf8] sm:$0xff] }
 0x131   : > { %1982 = vst [vmem:[%s2709_s9 + $0xc8] sm:$0xff] %v812_v2  ;;  %1145 = vmatmul.f32.gmra.mxu2 %v885_v0  ;;  %v619_v3 = vpop.f32.mrf.mxu0 }
 0x132   : > { %1210 = vmatmul.f32.gmra.mxu3 %v886_v1  ;;  %v620_v7 = vadd.f32 %v619_v3, %v2702_v49 }
 0x134   : > { %v684_v9 = vpop.f32.mrf.mxu1  ;;  %v749_v10 = vpop.f32.mrf.mxu2  ;;  %1015 = vmatmul.f32.gmra.mxu0 %v885_v0 }
 0x135   : > { %v685_v11 = vadd.f32 %v684_v9, %v620_v7  ;;  %v814_v12 = vpop.f32.mrf.mxu3  ;;  %v750_v13 = vadd.f32 %v749_v10, %v2704_v51  ;;  %v1262_v9 = vld [vmem:[%s2662_s13] sm:$0xff]  ;;  %v1263_v10 = vld [vmem:[%s2662_s13 + $0x8] sm:$0xff] }
 0x137   : > { %842 = vst [vmem:[%s2709_s9 + $0x50] sm:$0xff] %v685_v11  ;;  %1080 = vmatmul.f32.gmra.mxu1 %v886_v1  ;;  %v815_v16 = vadd.f32 %v814_v12, %v750_v13  ;;  %v2804_v11 = vperm.slane %v963_v4, 0  ;;  %v2807_v13 = vperm.slane %v963_v4, 1 }
 0x139   : > { %1983 = vst [vmem:[%s2709_s9 + $0xd0] sm:$0xff] %v815_v16  ;;  %1148 = vmatmul.f32.gmra.mxu2 %v887_v14  ;;  %v622_v17 = vpop.f32.mrf.mxu0 }
 0x13a   : > { %1213 = vmatmul.f32.gmra.mxu3 %v888_v15  ;;  %v623_v21 = vadd.f32 %v622_v17, %v2702_v49 }
 0x13c   : > { %v687_v23 = vpop.f32.mrf.mxu1  ;;  %v752_v24 = vpop.f32.mrf.mxu2  ;;  %1018 = vmatmul.f32.gmra.mxu0 %v887_v14 }
 0x13d   : > { %v688_v25 = vadd.f32 %v687_v23, %v623_v21  ;;  %v817_v26 = vpop.f32.mrf.mxu3  ;;  %v753_v27 = vadd.f32 %v752_v24, %v2704_v51 }
 0x13f   : > { %843 = vst [vmem:[%s2709_s9 + $0x58] sm:$0xff] %v688_v25  ;;  %1083 = vmatmul.f32.gmra.mxu1 %v888_v15  ;;  %v818_v30 = vadd.f32 %v817_v26, %v753_v27 }
 0x141   : > { %1984 = vst [vmem:[%s2709_s9 + $0xd8] sm:$0xff] %v818_v30  ;;  %1151 = vmatmul.f32.gmra.mxu2 %v889_v28  ;;  %v625_v31 = vpop.f32.mrf.mxu0  ;;  %v1267_v30 = vld [vmem:[%s2662_s13 + $0x28] sm:$0xff] }
 0x142   : > { %1216 = vmatmul.f32.gmra.mxu3 %v890_v29  ;;  %v626_v34 = vadd.f32 %v625_v31, %v2702_v49 }
 0x144   : > { %v690_v35 = vpop.f32.mrf.mxu1  ;;  %v755_v36 = vpop.f32.mrf.mxu2  ;;  %1021 = vmatmul.f32.gmra.mxu0 %v889_v28 }
 0x145   : > { %v691_v37 = vadd.f32 %v690_v35, %v626_v34  ;;  %v820_v38 = vpop.f32.mrf.mxu3  ;;  %v756_v39 = vadd.f32 %v755_v36, %v2704_v51 }
 0x147   : > { %844 = vst [vmem:[%s2709_s9 + $0x60] sm:$0xff] %v691_v37  ;;  %1086 = vmatmul.f32.gmra.mxu1 %v890_v29  ;;  %v821_v42 = vadd.f32 %v820_v38, %v756_v39  ;;  %v1266_v29 = vld [vmem:[%s2662_s13 + $0x20] sm:$0xff]  ;;  %v1268_v39 = vld [vmem:[%s2662_s13 + $0x30] sm:$0xff] }
 0x149   : > { %1985 = vst [vmem:[%s2709_s9 + $0xe0] sm:$0xff] %v821_v42  ;;  %1154 = vmatmul.f32.gmra.mxu2 %v891_v40  ;;  %v628_v43 = vpop.f32.mrf.mxu0 }
 0x14a   : > { %1219 = vmatmul.f32.gmra.mxu3 %v892_v41  ;;  %v629_v44 = vadd.f32 %v628_v43, %v2702_v49 }
 0x14c   : > { %v693_v45 = vpop.f32.mrf.mxu1  ;;  %v758_v46 = vpop.f32.mrf.mxu2  ;;  %1024 = vmatmul.f32.gmra.mxu0 %v891_v40  ;;  %v1269_v40 = vld [vmem:[%s2662_s13 + $0x38] sm:$0xff] }
 0x14d   : > { %v694_v47 = vadd.f32 %v693_v45, %v629_v44  ;;  %v823_v48 = vpop.f32.mrf.mxu3  ;;  %v759_v50 = vadd.f32 %v758_v46, %v2704_v51 }
 0x14f   : > { %845 = vst [vmem:[%s2709_s9 + $0x68] sm:$0xff] %v694_v47  ;;  %1089 = vmatmul.f32.gmra.mxu1 %v892_v41  ;;  %v824_v54 = vadd.f32 %v823_v48, %v759_v50  ;;  %v1270_v50 = vld [vmem:[%s2662_s13 + $0x40] sm:$0xff] }
 0x151   : > { %1986 = vst [vmem:[%s2709_s9 + $0xe8] sm:$0xff] %v824_v54  ;;  %1157 = vmatmul.f32.gmra.mxu2 %v893_v52  ;;  %v631_v55 = vpop.f32.mrf.mxu0 }
 0x152   : > { %1222 = vmatmul.f32.gmra.mxu3 %v894_v53  ;;  %v632_v56 = vadd.f32 %v631_v55, %v2702_v49 }
 0x154   : > { %v696_v57 = vpop.f32.mrf.mxu1  ;;  %v761_v58 = vpop.f32.mrf.mxu2  ;;  %1027 = vmatmul.f32.gmra.mxu0 %v893_v52  ;;  %v1271_v52 = vld [vmem:[%s2662_s13 + $0x48] sm:$0xff] }
 0x155   : > { %v697_v59 = vadd.f32 %v696_v57, %v632_v56  ;;  %v826_v60 = vpop.f32.mrf.mxu3  ;;  %v762_v61 = vadd.f32 %v761_v58, %v2704_v51 }
 0x157   : > { %846 = vst [vmem:[%s2709_s9 + $0x70] sm:$0xff] %v697_v59  ;;  %1092 = vmatmul.f32.gmra.mxu1 %v894_v53  ;;  %v827_v0 = vadd.f32 %v826_v60, %v762_v61  ;;  %v1272_v61 = vld [vmem:[%s2662_s13 + $0x50] sm:$0xff] }
 0x159   : > { %1987 = vst [vmem:[%s2709_s9 + $0xf0] sm:$0xff] %v827_v0  ;;  %1160 = vmatmul.f32.gmra.mxu2 %v895_v62  ;;  %v634_v1 = vpop.f32.mrf.mxu0 }
 0x15a   : > { %1225 = vmatmul.f32.gmra.mxu3 %v896_v63  ;;  %v635_v2 = vadd.f32 %v634_v1, %v2702_v49 }
 0x15c   : > { %v699_v3 = vpop.f32.mrf.mxu1  ;;  %v764_v5 = vpop.f32.mrf.mxu2  ;;  %1030 = vmatmul.f32.gmra.mxu0 %v895_v62  ;;  %v1273_v62 = vld [vmem:[%s2662_s13 + $0x58] sm:$0xff] }
 0x15d   : > { %v700_v6 = vadd.f32 %v699_v3, %v635_v2  ;;  %v829_v7 = vpop.f32.mrf.mxu3  ;;  %v765_v8 = vadd.f32 %v764_v5, %v2704_v51 }
 0x15f   : > { %847 = vst [vmem:[%s2709_s9 + $0x78] sm:$0xff] %v700_v6  ;;  %1095 = vmatmul.f32.gmra.mxu1 %v896_v63  ;;  %v830_v12 = vadd.f32 %v829_v7, %v765_v8  ;;  %v1274_v7 = vld [vmem:[%s2662_s13 + $0x60] sm:$0xff]  ;;  %v1275_v8 = vld [vmem:[%s2662_s13 + $0x68] sm:$0xff] }
 0x161   : > { %1988 = vst [vmem:[%s2709_s9 + $0xf8] sm:$0xff] %v830_v12  ;;  %1512 = vmatmul.f32.vlgmr.msra.gmra.mxu2 %v1262_v9  ;;  %v986_v49 = vpop.f32.mrf.mxu0 }
 0x162   : > { %1577 = vmatmul.f32.vlgmr.msra.gmra.mxu3 %v1263_v10  ;;  %v987_v14 = vadd.f32 %v986_v49, %v2804_v11 }
 0x164   : > { %v1051_v15 = vpop.f32.mrf.mxu1  ;;  %v1116_v51 = vpop.f32.mrf.mxu2  ;;  %1382 = vmatmul.f32.vlgmr.msra.gmra.mxu0 %v1262_v9 }
 0x165   : > { %v1052_v16 = vadd.f32 %v1051_v15, %v987_v14  ;;  %v1181_v17 = vpop.f32.mrf.mxu3  ;;  %v1117_v18 = vadd.f32 %v1116_v51, %v2807_v13 }
 0x167   : > { %1229 = vst [vmem:[%s2812_s15] sm:$0xff] %v1052_v16  ;;  %1447 = vmatmul.f32.vlgmr.msra.gmra.mxu1 %v1263_v10  ;;  %v1182_v21 = vadd.f32 %v1181_v17, %v1117_v18  ;;  %v1276_v17 = vld [vmem:[%s2662_s13 + $0x70] sm:$0xff]  ;;  %v1277_v18 = vld [vmem:[%s2662_s13 + $0x78] sm:$0xff] }
 0x169   : > { %1989 = vst [vmem:[%s2812_s15 + $0x80] sm:$0xff] %v1182_v21  ;;  %1515 = vmatmul.f32.gmra.mxu2 %v1264_v19  ;;  %v989_v22 = vpop.f32.mrf.mxu0 }
 0x16a   : > { %1580 = vmatmul.f32.gmra.mxu3 %v1265_v20  ;;  %v990_v23 = vadd.f32 %v989_v22, %v2804_v11 }
 0x16c   : > { %v1054_v24 = vpop.f32.mrf.mxu1  ;;  %v1119_v25 = vpop.f32.mrf.mxu2  ;;  %1385 = vmatmul.f32.gmra.mxu0 %v1264_v19 }
 0x16d   : > { %v1055_v26 = vadd.f32 %v1054_v24, %v990_v23  ;;  %v1184_v27 = vpop.f32.mrf.mxu3  ;;  %v1120_v28 = vadd.f32 %v1119_v25, %v2807_v13 }
 0x16f   : > { %1230 = vst [vmem:[%s2812_s15 + $0x8] sm:$0xff] %v1055_v26  ;;  %1450 = vmatmul.f32.gmra.mxu1 %v1265_v20  ;;  %v1185_v31 = vadd.f32 %v1184_v27, %v1120_v28  ;;  %v1278_v27 = vld [vmem:[%s2662_s13 + $0x80] sm:$0xff]  ;;  %v1279_v28 = vld [vmem:[%s2662_s13 + $0x88] sm:$0xff] }
 0x171   : > { %1990 = vst [vmem:[%s2812_s15 + $0x88] sm:$0xff] %v1185_v31  ;;  %1518 = vmatmul.f32.gmra.mxu2 %v1266_v29  ;;  %v992_v32 = vpop.f32.mrf.mxu0 }
 0x172   : > { %1583 = vmatmul.f32.gmra.mxu3 %v1267_v30  ;;  %v993_v33 = vadd.f32 %v992_v32, %v2804_v11 }
 0x174   : > { %v1057_v34 = vpop.f32.mrf.mxu1  ;;  %v1122_v35 = vpop.f32.mrf.mxu2  ;;  %1388 = vmatmul.f32.gmra.mxu0 %v1266_v29 }
 0x175   : > { %v1058_v36 = vadd.f32 %v1057_v34, %v993_v33  ;;  %v1187_v37 = vpop.f32.mrf.mxu3  ;;  %v1123_v38 = vadd.f32 %v1122_v35, %v2807_v13 }
 0x177   : > { %1231 = vst [vmem:[%s2812_s15 + $0x10] sm:$0xff] %v1058_v36  ;;  %1453 = vmatmul.f32.gmra.mxu1 %v1267_v30  ;;  %v1188_v41 = vadd.f32 %v1187_v37, %v1123_v38  ;;  %v1280_v37 = vld [vmem:[%s2662_s13 + $0x90] sm:$0xff]  ;;  %v1281_v38 = vld [vmem:[%s2662_s13 + $0x98] sm:$0xff] }
 0x179   : > { %1991 = vst [vmem:[%s2812_s15 + $0x90] sm:$0xff] %v1188_v41  ;;  %1521 = vmatmul.f32.gmra.mxu2 %v1268_v39  ;;  %v995_v42 = vpop.f32.mrf.mxu0 }
 0x17a   : > { %1586 = vmatmul.f32.gmra.mxu3 %v1269_v40  ;;  %v996_v43 = vadd.f32 %v995_v42, %v2804_v11 }
 0x17c   : > { %v1060_v44 = vpop.f32.mrf.mxu1  ;;  %v1125_v45 = vpop.f32.mrf.mxu2  ;;  %1391 = vmatmul.f32.gmra.mxu0 %v1268_v39 }
 0x17d   : > { %v1061_v46 = vadd.f32 %v1060_v44, %v996_v43  ;;  %v1190_v47 = vpop.f32.mrf.mxu3  ;;  %v1126_v48 = vadd.f32 %v1125_v45, %v2807_v13 }
 0x17f   : > { %1232 = vst [vmem:[%s2812_s15 + $0x18] sm:$0xff] %v1061_v46  ;;  %1456 = vmatmul.f32.gmra.mxu1 %v1269_v40  ;;  %v1191_v53 = vadd.f32 %v1190_v47, %v1126_v48  ;;  %v1282_v47 = vld [vmem:[%s2662_s13 + $0xa0] sm:$0xff]  ;;  %v1283_v48 = vld [vmem:[%s2662_s13 + $0xa8] sm:$0xff] }
 0x181   : > { %1992 = vst [vmem:[%s2812_s15 + $0x98] sm:$0xff] %v1191_v53  ;;  %1524 = vmatmul.f32.gmra.mxu2 %v1270_v50  ;;  %v998_v54 = vpop.f32.mrf.mxu0 }
 0x182   : > { %1589 = vmatmul.f32.gmra.mxu3 %v1271_v52  ;;  %v999_v55 = vadd.f32 %v998_v54, %v2804_v11 }
 0x184   : > { %v1063_v56 = vpop.f32.mrf.mxu1  ;;  %v1128_v57 = vpop.f32.mrf.mxu2  ;;  %1394 = vmatmul.f32.gmra.mxu0 %v1270_v50 }
 0x185   : > { %v1064_v58 = vadd.f32 %v1063_v56, %v999_v55  ;;  %v1193_v59 = vpop.f32.mrf.mxu3  ;;  %v1129_v60 = vadd.f32 %v1128_v57, %v2807_v13 }
 0x187   : > { %1233 = vst [vmem:[%s2812_s15 + $0x20] sm:$0xff] %v1064_v58  ;;  %1459 = vmatmul.f32.gmra.mxu1 %v1271_v52  ;;  %v1194_v63 = vadd.f32 %v1193_v59, %v1129_v60  ;;  %v1284_v59 = vld [vmem:[%s2662_s13 + $0xb0] sm:$0xff]  ;;  %v1285_v60 = vld [vmem:[%s2662_s13 + $0xb8] sm:$0xff] }
 0x189   : > { %1993 = vst [vmem:[%s2812_s15 + $0xa0] sm:$0xff] %v1194_v63  ;;  %1527 = vmatmul.f32.gmra.mxu2 %v1272_v61  ;;  %v1001_v0 = vpop.f32.mrf.mxu0 }
 0x18a   : > { %1592 = vmatmul.f32.gmra.mxu3 %v1273_v62  ;;  %v1002_v1 = vadd.f32 %v1001_v0, %v2804_v11 }
 0x18c   : > { %v1066_v2 = vpop.f32.mrf.mxu1  ;;  %v1131_v3 = vpop.f32.mrf.mxu2  ;;  %1397 = vmatmul.f32.gmra.mxu0 %v1272_v61 }
 0x18d   : > { %v1067_v4 = vadd.f32 %v1066_v2, %v1002_v1  ;;  %v1196_v5 = vpop.f32.mrf.mxu3  ;;  %v1132_v6 = vadd.f32 %v1131_v3, %v2807_v13 }
 0x18f   : > { %1234 = vst [vmem:[%s2812_s15 + $0x28] sm:$0xff] %v1067_v4  ;;  %1462 = vmatmul.f32.gmra.mxu1 %v1273_v62  ;;  %v1197_v9 = vadd.f32 %v1196_v5, %v1132_v6  ;;  %v1286_v5 = vld [vmem:[%s2662_s13 + $0xc0] sm:$0xff]  ;;  %v1287_v6 = vld [vmem:[%s2662_s13 + $0xc8] sm:$0xff] }
 0x191   : > { %1994 = vst [vmem:[%s2812_s15 + $0xa8] sm:$0xff] %v1197_v9  ;;  %1530 = vmatmul.f32.gmra.mxu2 %v1274_v7  ;;  %v1004_v10 = vpop.f32.mrf.mxu0 }
 0x192   : > { %1595 = vmatmul.f32.gmra.mxu3 %v1275_v8  ;;  %v1005_v12 = vadd.f32 %v1004_v10, %v2804_v11 }
 0x194   : > { %v1069_v49 = vpop.f32.mrf.mxu1  ;;  %v1134_v14 = vpop.f32.mrf.mxu2  ;;  %1400 = vmatmul.f32.gmra.mxu0 %v1274_v7 }
 0x195   : > { %v1070_v15 = vadd.f32 %v1069_v49, %v1005_v12  ;;  %v1199_v51 = vpop.f32.mrf.mxu3  ;;  %v1135_v16 = vadd.f32 %v1134_v14, %v2807_v13 }
 0x197   : > { %1235 = vst [vmem:[%s2812_s15 + $0x30] sm:$0xff] %v1070_v15  ;;  %1465 = vmatmul.f32.gmra.mxu1 %v1275_v8  ;;  %v1200_v19 = vadd.f32 %v1199_v51, %v1135_v16  ;;  %v1288_v51 = vld [vmem:[%s2662_s13 + $0xd0] sm:$0xff]  ;;  %v1289_v16 = vld [vmem:[%s2662_s13 + $0xd8] sm:$0xff] }
 0x199   : > { %1995 = vst [vmem:[%s2812_s15 + $0xb0] sm:$0xff] %v1200_v19  ;;  %1533 = vmatmul.f32.gmra.mxu2 %v1276_v17  ;;  %v1007_v20 = vpop.f32.mrf.mxu0 }
 0x19a   : > { %1598 = vmatmul.f32.gmra.mxu3 %v1277_v18  ;;  %v1008_v21 = vadd.f32 %v1007_v20, %v2804_v11 }
 0x19c   : > { %v1072_v22 = vpop.f32.mrf.mxu1  ;;  %v1137_v23 = vpop.f32.mrf.mxu2  ;;  %1403 = vmatmul.f32.gmra.mxu0 %v1276_v17 }
 0x19d   : > { %v1073_v24 = vadd.f32 %v1072_v22, %v1008_v21  ;;  %v1202_v25 = vpop.f32.mrf.mxu3  ;;  %v1138_v26 = vadd.f32 %v1137_v23, %v2807_v13 }
 0x19f   : > { %1236 = vst [vmem:[%s2812_s15 + $0x38] sm:$0xff] %v1073_v24  ;;  %1468 = vmatmul.f32.gmra.mxu1 %v1277_v18  ;;  %v1203_v29 = vadd.f32 %v1202_v25, %v1138_v26  ;;  %v1290_v25 = vld [vmem:[%s2662_s13 + $0xe0] sm:$0xff]  ;;  %v1291_v26 = vld [vmem:[%s2662_s13 + $0xe8] sm:$0xff] }
 0x1a1   : > { %1996 = vst [vmem:[%s2812_s15 + $0xb8] sm:$0xff] %v1203_v29  ;;  %1536 = vmatmul.f32.gmra.mxu2 %v1278_v27  ;;  %v1010_v30 = vpop.f32.mrf.mxu0 }
 0x1a2   : > { %1601 = vmatmul.f32.gmra.mxu3 %v1279_v28  ;;  %v1011_v31 = vadd.f32 %v1010_v30, %v2804_v11 }
 0x1a4   : > { %v1075_v32 = vpop.f32.mrf.mxu1  ;;  %v1140_v33 = vpop.f32.mrf.mxu2  ;;  %1406 = vmatmul.f32.gmra.mxu0 %v1278_v27 }
 0x1a5   : > { %v1076_v34 = vadd.f32 %v1075_v32, %v1011_v31  ;;  %v1205_v35 = vpop.f32.mrf.mxu3  ;;  %v1141_v36 = vadd.f32 %v1140_v33, %v2807_v13 }
 0x1a7   : > { %1237 = vst [vmem:[%s2812_s15 + $0x40] sm:$0xff] %v1076_v34  ;;  %1471 = vmatmul.f32.gmra.mxu1 %v1279_v28  ;;  %v1206_v39 = vadd.f32 %v1205_v35, %v1141_v36  ;;  %v1292_v35 = vld [vmem:[%s2662_s13 + $0xf0] sm:$0xff]  ;;  %v1293_v36 = vld [vmem:[%s2662_s13 + $0xf8] sm:$0xff] }
 0x1a9   : > { %1997 = vst [vmem:[%s2812_s15 + $0xc0] sm:$0xff] %v1206_v39  ;;  %1539 = vmatmul.f32.gmra.mxu2 %v1280_v37  ;;  %v1013_v40 = vpop.f32.mrf.mxu0 }
 0x1aa   : > { %1604 = vmatmul.f32.gmra.mxu3 %v1281_v38  ;;  %v1014_v41 = vadd.f32 %v1013_v40, %v2804_v11 }
 0x1ac   : > { %v1078_v42 = vpop.f32.mrf.mxu1  ;;  %v1143_v43 = vpop.f32.mrf.mxu2  ;;  %1409 = vmatmul.f32.gmra.mxu0 %v1280_v37 }
 0x1ad   : > { %v1079_v44 = vadd.f32 %v1078_v42, %v1014_v41  ;;  %v1208_v45 = vpop.f32.mrf.mxu3  ;;  %v1144_v46 = vadd.f32 %v1143_v43, %v2807_v13  ;;  %v1360_v41 = vld [vmem:[#allocation10 + $0x4] sm:$0x3] }
 0x1af   : > { %1238 = vst [vmem:[%s2812_s15 + $0x48] sm:$0xff] %v1079_v44  ;;  %1474 = vmatmul.f32.gmra.mxu1 %v1281_v38  ;;  %v1209_v50 = vadd.f32 %v1208_v45, %v1144_v46  ;;  %v2908_v46 = vperm.slane %v1360_v41, 0 }
 0x1b1   : > { %1998 = vst [vmem:[%s2812_s15 + $0xc8] sm:$0xff] %v1209_v50  ;;  %1542 = vmatmul.f32.gmra.mxu2 %v1282_v47  ;;  %v1016_v52 = vpop.f32.mrf.mxu0 }
 0x1b2   : > { %1607 = vmatmul.f32.gmra.mxu3 %v1283_v48  ;;  %v1017_v53 = vadd.f32 %v1016_v52, %v2804_v11 }
 0x1b4   : > { %v1081_v54 = vpop.f32.mrf.mxu1  ;;  %v1146_v55 = vpop.f32.mrf.mxu2  ;;  %1412 = vmatmul.f32.gmra.mxu0 %v1282_v47 }
 0x1b5   : > { %v1082_v56 = vadd.f32 %v1081_v54, %v1017_v53  ;;  %v1211_v57 = vpop.f32.mrf.mxu3  ;;  %v1147_v58 = vadd.f32 %v1146_v55, %v2807_v13 }
 0x1b7   : > { %1239 = vst [vmem:[%s2812_s15 + $0x50] sm:$0xff] %v1082_v56  ;;  %1477 = vmatmul.f32.gmra.mxu1 %v1283_v48  ;;  %v1212_v61 = vadd.f32 %v1211_v57, %v1147_v58  ;;  %v2916_v48 = vperm.slane %v1360_v41, 1 }
 0x1b9   : > { %1999 = vst [vmem:[%s2812_s15 + $0xd0] sm:$0xff] %v1212_v61  ;;  %1545 = vmatmul.f32.gmra.mxu2 %v1284_v59  ;;  %v1019_v62 = vpop.f32.mrf.mxu0 }
 0x1ba   : > { %1610 = vmatmul.f32.gmra.mxu3 %v1285_v60  ;;  %v1020_v63 = vadd.f32 %v1019_v62, %v2804_v11 }
 0x1bc   : > { %v1084_v0 = vpop.f32.mrf.mxu1  ;;  %v1149_v1 = vpop.f32.mrf.mxu2  ;;  %1415 = vmatmul.f32.gmra.mxu0 %v1284_v59 }
 0x1bd   : > { %v1085_v2 = vadd.f32 %v1084_v0, %v1020_v63  ;;  %v1214_v3 = vpop.f32.mrf.mxu3  ;;  %v1150_v4 = vadd.f32 %v1149_v1, %v2807_v13 }
 0x1bf   : > { %1240 = vst [vmem:[%s2812_s15 + $0x58] sm:$0xff] %v1085_v2  ;;  %1480 = vmatmul.f32.gmra.mxu1 %v1285_v60  ;;  %v1215_v7 = vadd.f32 %v1214_v3, %v1150_v4 }
 0x1c1   : > { %2000 = vst [vmem:[%s2812_s15 + $0xd8] sm:$0xff] %v1215_v7  ;;  %1548 = vmatmul.f32.gmra.mxu2 %v1286_v5  ;;  %v1022_v8 = vpop.f32.mrf.mxu0 }
 0x1c2   : > { %1613 = vmatmul.f32.gmra.mxu3 %v1287_v6  ;;  %v1023_v9 = vadd.f32 %v1022_v8, %v2804_v11 }
 0x1c4   : > { %v1087_v10 = vpop.f32.mrf.mxu1  ;;  %v1152_v12 = vpop.f32.mrf.mxu2  ;;  %1418 = vmatmul.f32.gmra.mxu0 %v1286_v5 }
 0x1c5   : > { %v1088_v49 = vadd.f32 %v1087_v10, %v1023_v9  ;;  %v1217_v14 = vpop.f32.mrf.mxu3  ;;  %v1153_v15 = vadd.f32 %v1152_v12, %v2807_v13 }
 0x1c7   : > { %1241 = vst [vmem:[%s2812_s15 + $0x60] sm:$0xff] %v1088_v49  ;;  %1483 = vmatmul.f32.gmra.mxu1 %v1287_v6  ;;  %v1218_v17 = vadd.f32 %v1217_v14, %v1153_v15 }
 0x1c9   : > { %2001 = vst [vmem:[%s2812_s15 + $0xe0] sm:$0xff] %v1218_v17  ;;  %1551 = vmatmul.f32.gmra.mxu2 %v1288_v51  ;;  %v1025_v18 = vpop.f32.mrf.mxu0 }
 0x1ca   : > { %1616 = vmatmul.f32.gmra.mxu3 %v1289_v16  ;;  %v1026_v19 = vadd.f32 %v1025_v18, %v2804_v11 }
 0x1cc   : > { %v1090_v20 = vpop.f32.mrf.mxu1  ;;  %v1155_v21 = vpop.f32.mrf.mxu2  ;;  %1421 = vmatmul.f32.gmra.mxu0 %v1288_v51 }
 0x1cd   : > { %v1091_v22 = vadd.f32 %v1090_v20, %v1026_v19  ;;  %v1220_v23 = vpop.f32.mrf.mxu3  ;;  %v1156_v24 = vadd.f32 %v1155_v21, %v2807_v13 }
 0x1cf   : > { %1242 = vst [vmem:[%s2812_s15 + $0x68] sm:$0xff] %v1091_v22  ;;  %1486 = vmatmul.f32.gmra.mxu1 %v1289_v16  ;;  %v1221_v27 = vadd.f32 %v1220_v23, %v1156_v24 }
 0x1d1   : > { %2002 = vst [vmem:[%s2812_s15 + $0xe8] sm:$0xff] %v1221_v27  ;;  %1554 = vmatmul.f32.gmra.mxu2 %v1290_v25  ;;  %v1028_v28 = vpop.f32.mrf.mxu0 }
 0x1d2   : > { %1619 = vmatmul.f32.gmra.mxu3 %v1291_v26  ;;  %v1029_v29 = vadd.f32 %v1028_v28, %v2804_v11 }
 0x1d4   : > { %v1093_v30 = vpop.f32.mrf.mxu1  ;;  %v1158_v31 = vpop.f32.mrf.mxu2  ;;  %1424 = vmatmul.f32.gmra.mxu0 %v1290_v25 }
 0x1d5   : > { %v1094_v32 = vadd.f32 %v1093_v30, %v1029_v29  ;;  %v1223_v33 = vpop.f32.mrf.mxu3  ;;  %v1159_v34 = vadd.f32 %v1158_v31, %v2807_v13 }
 0x1d7   : > { %1243 = vst [vmem:[%s2812_s15 + $0x70] sm:$0xff] %v1094_v32  ;;  %1489 = vmatmul.f32.gmra.mxu1 %v1291_v26  ;;  %v1224_v37 = vadd.f32 %v1223_v33, %v1159_v34 }
 0x1d9   : > { %2003 = vst [vmem:[%s2812_s15 + $0xf0] sm:$0xff] %v1224_v37  ;;  %1557 = vmatmul.f32.gmra.mxu2 %v1292_v35  ;;  %v1031_v38 = vpop.f32.mrf.mxu0 }
 0x1da   : > { %1622 = vmatmul.f32.gmra.mxu3 %v1293_v36  ;;  %v1032_v39 = vadd.f32 %v1031_v38, %v2804_v11 }
 0x1dc   : > { %v1096_v40 = vpop.f32.mrf.mxu1  ;;  %v1161_v42 = vpop.f32.mrf.mxu2  ;;  %1427 = vmatmul.f32.gmra.mxu0 %v1292_v35 }
 0x1dd   : > { %v1097_v43 = vadd.f32 %v1096_v40, %v1032_v39  ;;  %v1226_v44 = vpop.f32.mrf.mxu3  ;;  %v1162_v45 = vadd.f32 %v1161_v42, %v2807_v13 }
 0x1df   : > { %1244 = vst [vmem:[%s2812_s15 + $0x78] sm:$0xff] %v1097_v43  ;;  %1492 = vmatmul.f32.gmra.mxu1 %v1293_v36  ;;  %v1227_v11 = vadd.f32 %v1226_v44, %v1162_v45 }
 0x1e1   : > { %2004 = vst [vmem:[%s2812_s15 + $0xf8] sm:$0xff] %v1227_v11  ;;  %v1383_v47 = vpop.f32.mrf.mxu0 }
 0x1e2   : > { %v1384_v13 = vadd.f32 %v1383_v47, %v2908_v46 }
 0x1e4   : > { %v1448_v50 = vpop.f32.mrf.mxu1 }
 0x1e5   : > { %2324 = shalt.err (!%p2321_p0)
}
 0x1e6   : > { %s2455_s30 = smov 128   ;;  %s2456_s24 = smov 8   ;;  %v1513_v52 = vpop.f32.mrf.mxu2  ;;  %v1449_v53 = vadd.f32 %v1448_v50, %v1384_v13  ;;  %v1578_v54 = vpop.f32.mrf.mxu3 }
 0x1e7   : > { %2053 = dma.vmem_to_hbm [thread:$0]  (%p2579_p5), %s1704_s3, 4096, %s1706_s28, %s2921_s27, %s2455_s30, %s2455_s30, %s2456_s24   ;;  %v1514_v55 = vadd.f32 %v1513_v52, %v2916_v48 }
 0x1e8   : > { %s1683_s14 = scalar_lea.hbm %s3071_s5, %s2905_s16  ;;  %s2943_s12 = scalar_lea.vmem [#allocation14], %s2641_s4 }
 0x1e9   : > { %1626 = vst [vmem:[%s2943_s12] sm:$0xff] %v1449_v53  ;;  %s1684_s13 = sshll.u32 %s2709_s9, 4  ;;  %s1686_s15 = sshll.u32 %s1683_s14, 4  ;;  %v1579_v56 = vadd.f32 %v1578_v54, %v1514_v55  ;;  %s1685_s13 = int_to_ptr.vmem [resolvable:$true] %s1684_s13  ;;  %s1687_s15 = int_to_ptr.hbm [resolvable:$true] %s1686_s15 }
 0x1ea   : > { %s1660_s21 = scalar_lea.sflag [#allocation4], %s2638_s7  ;;  %s2339_s20 = sshra.s32 %s1687_s15, 4  ;;  %s2340_s20 = int_to_ptr.hbm [resolvable:$true] %s2339_s20 }
 0x1eb   : > { %s2341_s8 = scalar_lea.hbm %s2340_s20, 256  ;;  %s2345_s4 = scalar_lea.hbm %s3071_s5, 512 }
 0x1ec   : > { %p2342_p3 = scmp.ne.s32.totalorder %s2340_s20, %s2341_s8  ;;  %p2346_p12 = scmp.lt.s32.totalorder %s2340_s20, %s3071_s5 }
 0x1ed   : > { %p2347_p1 = scmp.lt.s32.totalorder %s2345_s4, %s2341_s8 }
 0x1ee   : > { %p2343_p7 = pnand %p2342_p3, %p2579_p5 }
 0x1ef   : > { %p2348_p2 = por %p2347_p1, %p2346_p12 }
 0x1f0   : > { %p2344_p9 = pneg %p2343_p7 }
 0x1f2   : > { %p2349_p4 = pnand %p2348_p2, %p2344_p9 }
 0x1f4   : > { %2352 = shalt.err (!%p2349_p4)
}
 0x1f5   : > { %2052 = dma.vmem_to_hbm [thread:$0]  (%p2579_p5), %s1685_s13, 4096, %s1687_s15, %s1660_s21, %s2455_s30, %s2455_s30, %s2456_s24   ;;  %v1386_v57 = vpop.f32.mrf.mxu0  ;;  %v1451_v59 = vpop.f32.mrf.mxu1 }
 0x1f6   : > { %2005 = vst [vmem:[%s2943_s12 + $0x80] sm:$0xff] %v1579_v56  ;;  %v1387_v58 = vadd.f32 %v1386_v57, %v2908_v46  ;;  %v1516_v60 = vpop.f32.mrf.mxu2  ;;  %v1581_v62 = vpop.f32.mrf.mxu3  ;;  %s3109_s19 = sld [smem:[#allocation30_spill]]  ;;  %s1722_s18 = sshll.u32 %s2943_s12, 4  ;;  %s1723_s18 = int_to_ptr.vmem [resolvable:$true] %s1722_s18 }
 0x1f7   : > { %v1517_v63 = vadd.f32 %v1516_v60, %v2916_v48 }
 0x1f8   : > { %v1452_v61 = vadd.f32 %v1451_v59, %v1387_v58 }
 0x1f9   : > { %v1582_v0 = vadd.f32 %v1581_v62, %v1517_v63 }
 0x1fa   : > { %1627 = vst [vmem:[%s2943_s12 + $0x8] sm:$0xff] %v1452_v61 }
 0x1fb   : > { %2006 = vst [vmem:[%s2943_s12 + $0x88] sm:$0xff] %v1582_v0 }
 0x1fc   : > { %s1721_s17 = scalar_lea.hbm %s3109_s19, %s2905_s16  ;;  %s2373_s14 = scalar_lea.hbm %s3109_s19, 512 }
 0x1fd   : > { %v1389_v1 = vpop.f32.mrf.mxu0  ;;  %v1454_v3 = vpop.f32.mrf.mxu1  ;;  %s1724_s1 = sshll.u32 %s1721_s17, 4  ;;  %s1725_s1 = int_to_ptr.hbm [resolvable:$true] %s1724_s1 }
 0x1fe   : > { %v1390_v2 = vadd.f32 %v1389_v1, %v2908_v46  ;;  %v1519_v4 = vpop.f32.mrf.mxu2  ;;  %v1584_v6 = vpop.f32.mrf.mxu3  ;;  %s2367_s23 = sshra.s32 %s1725_s1, 4  ;;  %s2368_s23 = int_to_ptr.hbm [resolvable:$true] %s2367_s23 }
 0x1ff   : > { %v1520_v7 = vadd.f32 %v1519_v4, %v2916_v48  ;;  %s2369_s11 = scalar_lea.hbm %s2368_s23, 256  ;;  %p2374_p0 = scmp.lt.s32.totalorder %s2368_s23, %s3109_s19 }
 0x200   : > { %v1455_v5 = vadd.f32 %v1454_v3, %v1390_v2  ;;  %p2370_p8 = scmp.ne.s32.totalorder %s2368_s23, %s2369_s11  ;;  %p2375_p3 = scmp.lt.s32.totalorder %s2373_s14, %s2369_s11 }
 0x201   : > { %v1585_v8 = vadd.f32 %v1584_v6, %v1520_v7 }
 0x202   : > { %1628 = vst [vmem:[%s2943_s12 + $0x10] sm:$0xff] %v1455_v5  ;;  %p2371_p10 = pnand %p2370_p8, %p2579_p5  ;;  %p2376_p7 = por %p2375_p3, %p2374_p0 }
 0x203   : > { %2007 = vst [vmem:[%s2943_s12 + $0x90] sm:$0xff] %v1585_v8 }
 0x204   : > { %p2372_p13 = pneg %p2371_p10 }
 0x205   : > { %v1392_v9 = vpop.f32.mrf.mxu0  ;;  %v1457_v12 = vpop.f32.mrf.mxu1 }
 0x206   : > { %v1393_v10 = vadd.f32 %v1392_v9, %v2908_v46  ;;  %v1522_v49 = vpop.f32.mrf.mxu2  ;;  %v1587_v15 = vpop.f32.mrf.mxu3  ;;  %p2377_p9 = pnand %p2376_p7, %p2372_p13 }
 0x207   : > { %v1523_v51 = vadd.f32 %v1522_v49, %v2916_v48 }
 0x208   : > { %v1458_v14 = vadd.f32 %v1457_v12, %v1393_v10 }
 0x209   : > { %v1588_v16 = vadd.f32 %v1587_v15, %v1523_v51 }
 0x20a   : > { %1629 = vst [vmem:[%s2943_s12 + $0x18] sm:$0xff] %v1458_v14 }
 0x20b   : > { %2008 = vst [vmem:[%s2943_s12 + $0x98] sm:$0xff] %v1588_v16 }
 0x20d   : > { %v1395_v17 = vpop.f32.mrf.mxu0  ;;  %v1460_v19 = vpop.f32.mrf.mxu1 }
 0x20e   : > { %v1396_v18 = vadd.f32 %v1395_v17, %v2908_v46  ;;  %v1525_v20 = vpop.f32.mrf.mxu2  ;;  %v1590_v22 = vpop.f32.mrf.mxu3 }
 0x20f   : > { %v1526_v23 = vadd.f32 %v1525_v20, %v2916_v48 }
 0x210   : > { %v1461_v21 = vadd.f32 %v1460_v19, %v1396_v18 }
 0x211   : > { %v1591_v24 = vadd.f32 %v1590_v22, %v1526_v23 }
 0x212   : > { %1630 = vst [vmem:[%s2943_s12 + $0x20] sm:$0xff] %v1461_v21 }
 0x213   : > { %2009 = vst [vmem:[%s2943_s12 + $0xa0] sm:$0xff] %v1591_v24 }
 0x215   : > { %v1398_v25 = vpop.f32.mrf.mxu0  ;;  %v1463_v27 = vpop.f32.mrf.mxu1 }
 0x216   : > { %v1399_v26 = vadd.f32 %v1398_v25, %v2908_v46  ;;  %v1528_v28 = vpop.f32.mrf.mxu2  ;;  %v1593_v30 = vpop.f32.mrf.mxu3 }
 0x217   : > { %v1529_v31 = vadd.f32 %v1528_v28, %v2916_v48 }
 0x218   : > { %v1464_v29 = vadd.f32 %v1463_v27, %v1399_v26 }
 0x219   : > { %v1594_v32 = vadd.f32 %v1593_v30, %v1529_v31 }
 0x21a   : > { %1631 = vst [vmem:[%s2943_s12 + $0x28] sm:$0xff] %v1464_v29 }
 0x21b   : > { %2010 = vst [vmem:[%s2943_s12 + $0xa8] sm:$0xff] %v1594_v32 }
 0x21d   : > { %v1401_v33 = vpop.f32.mrf.mxu0  ;;  %v1466_v35 = vpop.f32.mrf.mxu1 }
 0x21e   : > { %v1402_v34 = vadd.f32 %v1401_v33, %v2908_v46  ;;  %v1531_v36 = vpop.f32.mrf.mxu2  ;;  %v1596_v38 = vpop.f32.mrf.mxu3 }
 0x21f   : > { %v1532_v39 = vadd.f32 %v1531_v36, %v2916_v48 }
 0x220   : > { %v1467_v37 = vadd.f32 %v1466_v35, %v1402_v34 }
 0x221   : > { %v1597_v40 = vadd.f32 %v1596_v38, %v1532_v39 }
 0x222   : > { %1632 = vst [vmem:[%s2943_s12 + $0x30] sm:$0xff] %v1467_v37 }
 0x223   : > { %2011 = vst [vmem:[%s2943_s12 + $0xb0] sm:$0xff] %v1597_v40 }
 0x225   : > { %v1404_v41 = vpop.f32.mrf.mxu0  ;;  %v1469_v43 = vpop.f32.mrf.mxu1 }
 0x226   : > { %v1405_v42 = vadd.f32 %v1404_v41, %v2908_v46  ;;  %v1534_v44 = vpop.f32.mrf.mxu2  ;;  %v1599_v11 = vpop.f32.mrf.mxu3 }
 0x227   : > { %v1535_v47 = vadd.f32 %v1534_v44, %v2916_v48 }
 0x228   : > { %v1470_v45 = vadd.f32 %v1469_v43, %v1405_v42 }
 0x229   : > { %v1600_v13 = vadd.f32 %v1599_v11, %v1535_v47 }
 0x22a   : > { %1633 = vst [vmem:[%s2943_s12 + $0x38] sm:$0xff] %v1470_v45 }
 0x22b   : > { %2012 = vst [vmem:[%s2943_s12 + $0xb8] sm:$0xff] %v1600_v13 }
 0x22d   : > { %v1407_v50 = vpop.f32.mrf.mxu0  ;;  %v1472_v53 = vpop.f32.mrf.mxu1 }
 0x22e   : > { %v1408_v52 = vadd.f32 %v1407_v50, %v2908_v46  ;;  %v1537_v54 = vpop.f32.mrf.mxu2  ;;  %v1602_v56 = vpop.f32.mrf.mxu3 }
 0x22f   : > { %v1538_v57 = vadd.f32 %v1537_v54, %v2916_v48 }
 0x230   : > { %v1473_v55 = vadd.f32 %v1472_v53, %v1408_v52 }
 0x231   : > { %v1603_v58 = vadd.f32 %v1602_v56, %v1538_v57 }
 0x232   : > { %1634 = vst [vmem:[%s2943_s12 + $0x40] sm:$0xff] %v1473_v55 }
 0x233   : > { %2013 = vst [vmem:[%s2943_s12 + $0xc0] sm:$0xff] %v1603_v58 }
 0x235   : > { %v1410_v59 = vpop.f32.mrf.mxu0  ;;  %v1475_v61 = vpop.f32.mrf.mxu1 }
 0x236   : > { %v1411_v60 = vadd.f32 %v1410_v59, %v2908_v46  ;;  %v1540_v62 = vpop.f32.mrf.mxu2  ;;  %v1605_v0 = vpop.f32.mrf.mxu3 }
 0x237   : > { %v1541_v1 = vadd.f32 %v1540_v62, %v2916_v48 }
 0x238   : > { %v1476_v63 = vadd.f32 %v1475_v61, %v1411_v60 }
 0x239   : > { %v1606_v2 = vadd.f32 %v1605_v0, %v1541_v1 }
 0x23a   : > { %1635 = vst [vmem:[%s2943_s12 + $0x48] sm:$0xff] %v1476_v63 }
 0x23b   : > { %2014 = vst [vmem:[%s2943_s12 + $0xc8] sm:$0xff] %v1606_v2 }
 0x23d   : > { %v1413_v3 = vpop.f32.mrf.mxu0  ;;  %v1478_v5 = vpop.f32.mrf.mxu1 }
 0x23e   : > { %v1414_v4 = vadd.f32 %v1413_v3, %v2908_v46  ;;  %v1543_v6 = vpop.f32.mrf.mxu2  ;;  %v1608_v8 = vpop.f32.mrf.mxu3 }
 0x23f   : > { %v1544_v9 = vadd.f32 %v1543_v6, %v2916_v48 }
 0x240   : > { %v1479_v7 = vadd.f32 %v1478_v5, %v1414_v4 }
 0x241   : > { %v1609_v10 = vadd.f32 %v1608_v8, %v1544_v9 }
 0x242   : > { %1636 = vst [vmem:[%s2943_s12 + $0x50] sm:$0xff] %v1479_v7 }
 0x243   : > { %2015 = vst [vmem:[%s2943_s12 + $0xd0] sm:$0xff] %v1609_v10 }
 0x245   : > { %v1416_v12 = vpop.f32.mrf.mxu0  ;;  %v1481_v14 = vpop.f32.mrf.mxu1 }
 0x246   : > { %v1417_v49 = vadd.f32 %v1416_v12, %v2908_v46  ;;  %v1546_v15 = vpop.f32.mrf.mxu2  ;;  %v1611_v16 = vpop.f32.mrf.mxu3 }
 0x247   : > { %v1547_v17 = vadd.f32 %v1546_v15, %v2916_v48 }
 0x248   : > { %v1482_v51 = vadd.f32 %v1481_v14, %v1417_v49 }
 0x249   : > { %v1612_v18 = vadd.f32 %v1611_v16, %v1547_v17 }
 0x24a   : > { %1637 = vst [vmem:[%s2943_s12 + $0x58] sm:$0xff] %v1482_v51 }
 0x24b   : > { %2016 = vst [vmem:[%s2943_s12 + $0xd8] sm:$0xff] %v1612_v18 }
 0x24d   : > { %v1419_v19 = vpop.f32.mrf.mxu0  ;;  %v1484_v21 = vpop.f32.mrf.mxu1 }
 0x24e   : > { %v1420_v20 = vadd.f32 %v1419_v19, %v2908_v46  ;;  %v1549_v22 = vpop.f32.mrf.mxu2  ;;  %v1614_v24 = vpop.f32.mrf.mxu3 }
 0x24f   : > { %v1550_v25 = vadd.f32 %v1549_v22, %v2916_v48 }
 0x250   : > { %v1485_v23 = vadd.f32 %v1484_v21, %v1420_v20 }
 0x251   : > { %v1615_v26 = vadd.f32 %v1614_v24, %v1550_v25 }
 0x252   : > { %1638 = vst [vmem:[%s2943_s12 + $0x60] sm:$0xff] %v1485_v23 }
 0x253   : > { %2017 = vst [vmem:[%s2943_s12 + $0xe0] sm:$0xff] %v1615_v26 }
 0x255   : > { %v1422_v27 = vpop.f32.mrf.mxu0  ;;  %v1487_v29 = vpop.f32.mrf.mxu1 }
 0x256   : > { %v1423_v28 = vadd.f32 %v1422_v27, %v2908_v46  ;;  %v1552_v30 = vpop.f32.mrf.mxu2  ;;  %v1617_v32 = vpop.f32.mrf.mxu3 }
 0x257   : > { %v1553_v33 = vadd.f32 %v1552_v30, %v2916_v48 }
 0x258   : > { %v1488_v31 = vadd.f32 %v1487_v29, %v1423_v28 }
 0x259   : > { %v1618_v34 = vadd.f32 %v1617_v32, %v1553_v33 }
 0x25a   : > { %1639 = vst [vmem:[%s2943_s12 + $0x68] sm:$0xff] %v1488_v31 }
 0x25b   : > { %2018 = vst [vmem:[%s2943_s12 + $0xe8] sm:$0xff] %v1618_v34 }
 0x25d   : > { %v1425_v35 = vpop.f32.mrf.mxu0  ;;  %v1490_v37 = vpop.f32.mrf.mxu1 }
 0x25e   : > { %v1426_v36 = vadd.f32 %v1425_v35, %v2908_v46  ;;  %v1555_v38 = vpop.f32.mrf.mxu2  ;;  %v1620_v40 = vpop.f32.mrf.mxu3 }
 0x25f   : > { %v1556_v41 = vadd.f32 %v1555_v38, %v2916_v48 }
 0x260   : > { %v1491_v39 = vadd.f32 %v1490_v37, %v1426_v36 }
 0x261   : > { %v1621_v42 = vadd.f32 %v1620_v40, %v1556_v41 }
 0x262   : > { %1640 = vst [vmem:[%s2943_s12 + $0x70] sm:$0xff] %v1491_v39 }
 0x263   : > { %2019 = vst [vmem:[%s2943_s12 + $0xf0] sm:$0xff] %v1621_v42 }
 0x265   : > { %v1428_v43 = vpop.f32.mrf.mxu0  ;;  %v1493_v45 = vpop.f32.mrf.mxu1 }
 0x266   : > { %v1429_v44 = vadd.f32 %v1428_v43, %v2908_v46  ;;  %v1558_v11 = vpop.f32.mrf.mxu2  ;;  %v1623_v13 = vpop.f32.mrf.mxu3 }
 0x267   : > { %v1559_v50 = vadd.f32 %v1558_v11, %v2916_v48 }
 0x268   : > { %v1494_v47 = vadd.f32 %v1493_v45, %v1429_v44 }
 0x269   : > { %v1624_v52 = vadd.f32 %v1623_v13, %v1559_v50 }
 0x26a   : > { %1641 = vst [vmem:[%s2943_s12 + $0x78] sm:$0xff] %v1494_v47 }
 0x26b   : > { %2020 = vst [vmem:[%s2943_s12 + $0xf8] sm:$0xff] %v1624_v52 }
 0x26c   : > { %2380 = shalt.err (!%p2377_p9)
}
 0x26d   : > { %2054 = dma.vmem_to_hbm [thread:$0]  (%p2579_p5), %s1723_s18, 4096, %s1725_s1, %s2921_s27, %s2455_s30, %s2455_s30, %s2456_s24  }
 0x26e PF: > { %s3110_s12 = sld [smem:[#allocation20_spill]]  ;;  %p2076_p12 = pnand %p1954_p11, %p2544_p6 }
 0x26f   : > { %s3112_s20 = sld [smem:[#allocation23_spill]] }
 0x270   : > { %p2077_p1 = pneg %p2076_p12 }
 0x274   : > { %s1739_s8 = sand.u32 1, %s3110_s12  }
 0x275   : > { %s1740_s3 = scalar_lea.sflag [#allocation4], %s1739_s8 }
 0x276   : > { %2418 = dma.done.wait (%p2077_p1), %s1740_s3, 4096  }
 0x277   : > { %2420 = vsyncadd (%p2077_p1), %s1740_s3, 4294963200  ;;  %s3113_s28 = sadd.s32 4294967294, %s3112_s20  }
 0x278   : > { %s1749_s22 = sand.u32 1, %s3113_s28  }
 0x279   : > { %s1750_s4 = scalar_lea.sflag [#allocation13], %s1749_s22 }
 0x27a   : > { %2422 = dma.done.wait (%p2077_p1), %s1750_s4, 8192  }
 0x27b   : > { %2424 = vsyncadd (%p2077_p1), %s1750_s4, 4294959104  ;;  %s31_s29 = sadd.s32 1, %s3112_s20   ;;  %s3114_s27 = sld [smem:[#allocation21_spill]] }
 0x27c   : > { %p28_p5 = scmp.ge.s32.totalorder %s31_s29, 4   ;;  %s3115_s26 = sld [smem:[#allocation26_spill]] }
 0x27d   : > { %s3116_s30 = sld [smem:[#allocation22_spill]]  ;;  %s3118_s24 = smov %s2431_s25 }
 0x27e   : > { %s3117_s28 = sld [smem:[#allocation25_spill]] }
 0x27f   :  { %30 = sbr.rel (!%p28_p5) target bundleno = 16 (0x10), region = 156 }
 0x281   : > { %s3119_s25 = smov %s3114_s27 }
 0x283   : > { %s3120_s27 = smov %s3116_s30 }
 0x284   :  { %1766 = vsyncpa [#allocation3], 1 }
 0x285   :  { %1768 = vsyncpa [#allocation3 + $0x1], 1 }
 0x286   :  { %1769 = vsyncpa [#allocation6], 1 }
 0x287   :  { %1771 = vsyncpa [#allocation6 + $0x1], 1 }
 0x288   :  { %1772 = vsyncpa [#allocation9], 1 }
 0x289   :  { %1773 = vsyncpa [#allocation4], 1 }
 0x28a   :  { %1775 = vsyncpa [#allocation4 + $0x1], 1 }
 0x28b   :  { %1776 = vsyncpa [#allocation13], 1 }
 0x28c   :  { %1778 = vsyncpa [#allocation13 + $0x1], 1 }

</bundles_post_ra>
